<compile_context>
chip_gen: v7x
topology: tpu7x:2x2x1
jax: 0.10.0
libtpu: 0.0.40
codegen_flags: <defaults>
</compile_context>

<pallas_src>
import functools

import jax
import jax.numpy as jnp
from jax.experimental import pallas as pl
from jax.experimental.pallas import tpu as pltpu


def _mlp_kernel(x_ref, w0_ref, b0_ref, w1_ref, b1_ref, w2_ref, b2_ref, o_ref):
    # Matmuls run in the weights' dtype (f32 or bf16); accumulation is always f32.
    compute_dtype = w0_ref.dtype

    # Layer 0: Linear(in_dim, width) + ReLU   (bias/ReLU in f32)
    h = jnp.dot(x_ref[...], w0_ref[...], preferred_element_type=jnp.float32)
    h = jnp.maximum(h + b0_ref[...], 0.0)

    # Layer 1: Linear(width, width) + ReLU
    h = jnp.dot(h.astype(compute_dtype), w1_ref[...],
                preferred_element_type=jnp.float32)
    h = jnp.maximum(h + b1_ref[...], 0.0)

    # Layer 2: Linear(width, out_dim), no activation
    o = jnp.dot(h.astype(compute_dtype), w2_ref[...],
                preferred_element_type=jnp.float32) + b2_ref[...]
    o_ref[...] = o.astype(o_ref.dtype)


@functools.partial(jax.jit, static_argnames=("tile_n", "use_bf16"))
def basic_mlp_pallas(x, w0, b0, w1, b1, w2, b2, *, tile_n=512, use_bf16=False):
    """y = relu(relu(x @ w0 + b0) @ w1 + b1) @ w2 + b2, tiled over the batch."""
    N, in_dim = x.shape
    width = w0.shape[1]
    out_dim = w2.shape[1]
    out_dtype = x.dtype

    # Pad arbitrary batch sizes up to a tile multiple; slice the result back.
    n_pad = (-N) % tile_n
    if n_pad:
        x = jnp.pad(x, ((0, n_pad), (0, 0)))
    n_padded = N + n_pad
    grid = (n_padded // tile_n,)

    if use_bf16:
        # bf16 matmul inputs; biases / accumulation / activation stay f32.
        x = x.astype(jnp.bfloat16)
        w0 = w0.astype(jnp.bfloat16)
        w1 = w1.astype(jnp.bfloat16)
        w2 = w2.astype(jnp.bfloat16)
    b0 = b0.astype(jnp.float32)
    b1 = b1.astype(jnp.float32)
    b2 = b2.astype(jnp.float32)

    in_itemsize = jnp.dtype(x.dtype).itemsize
    out_itemsize = jnp.dtype(out_dtype).itemsize
    weight_elems = in_dim * width + width * width + width * out_dim
    bias_bytes = (2 * width + out_dim) * 4

    cost = pl.CostEstimate(
        flops=2 * n_padded * weight_elems,
        transcendentals=0,
        bytes_accessed=int(n_padded * in_dim * in_itemsize
                           + n_padded * out_dim * out_itemsize
                           + weight_elems * in_itemsize + bias_bytes),
    )

    # Rough per-step VMEM footprint: double-buffered x/out tiles, resident
    # weights, and the compiler-managed (tile_n, width) f32 intermediates.
    vmem_need = (2 * tile_n * in_dim * in_itemsize
                 + 2 * tile_n * out_dim * out_itemsize
                 + 2 * tile_n * width * 4
                 + weight_elems * in_itemsize + bias_bytes)
    compiler_kwargs = dict(dimension_semantics=("parallel",))
    if vmem_need > (12 << 20):  # only needed for very large tiles (v5e 16 MiB default)
        compiler_kwargs["vmem_limit_bytes"] = min(int(vmem_need * 2), 64 << 20)

    out = pl.pallas_call(
        _mlp_kernel,
        out_shape=jax.ShapeDtypeStruct((n_padded, out_dim), out_dtype),
        grid_spec=pltpu.PrefetchScalarGridSpec(
            num_scalar_prefetch=0,
            grid=grid,
            in_specs=[
                pl.BlockSpec((tile_n, in_dim), lambda i: (i, 0)),   # x tile
                pl.BlockSpec((in_dim, width), lambda i: (0, 0)),    # W0 (resident)
                pl.BlockSpec((1, width), lambda i: (0, 0)),         # b0
                pl.BlockSpec((width, width), lambda i: (0, 0)),     # W1 (resident)
                pl.BlockSpec((1, width), lambda i: (0, 0)),         # b1
                pl.BlockSpec((width, out_dim), lambda i: (0, 0)),   # W2 (resident)
                pl.BlockSpec((1, out_dim), lambda i: (0, 0)),       # b2
            ],
            out_specs=pl.BlockSpec((tile_n, out_dim), lambda i: (i, 0)),
        ),
        compiler_params=pltpu.CompilerParams(**compiler_kwargs),
        cost_estimate=cost,
    )(x, w0, b0, w1, b1, w2, b2)

    if n_pad:
        out = out[:N]
    return out


def init_params(key, in_dim, width, out_dim):
    """Mimic nn.Linear default init (uniform +/- 1/sqrt(fan_in)); weights stored
    as (fan_in, fan_out) so x @ W == PyTorch x @ weight.T. Last bias = 0."""
    k0, k1, k2, kb0, kb1 = jax.random.split(key, 5)

    def lin(kw, fan_in, fan_out):
        bound = 1.0 / jnp.sqrt(jnp.float32(fan_in))
        return jax.random.uniform(kw, (fan_in, fan_out), jnp.float32, -bound, bound)

    w0 = lin(k0, in_dim, width)
    b0 = jax.random.uniform(kb0, (1, width), jnp.float32,
                            -1.0 / jnp.sqrt(jnp.float32(in_dim)),
                            1.0 / jnp.sqrt(jnp.float32(in_dim)))
    w1 = lin(k1, width, width)
    b1 = jax.random.uniform(kb1, (1, width), jnp.float32,
                            -1.0 / jnp.sqrt(jnp.float32(width)),
                            1.0 / jnp.sqrt(jnp.float32(width)))
    w2 = lin(k2, width, out_dim)
    b2 = jnp.zeros((1, out_dim), jnp.float32)  # nn.init.constant_(net[-1].bias, 0)
    return w0, b0, w1, b1, w2, b2


def reference_mlp(x, w0, b0, w1, b1, w2, b2):
    h = jnp.maximum(x @ w0 + b0, 0.0)
    h = jnp.maximum(h @ w1 + b1, 0.0)
    return h @ w2 + b2


if __name__ == "__main__":
    # Small shapes consistent with the module defaults (depth=3, width=128, out_dim=3).
    N, in_dim, width, out_dim = 1024, 16, 128, 3

    key = jax.random.PRNGKey(0)
    kx, kp = jax.random.split(key)
    x = jax.random.normal(kx, (N, in_dim), jnp.float32)
    params = init_params(kp, in_dim, width, out_dim)

    ref = reference_mlp(x, *params)

    # f32 path: exact-ish match against the reference.
    out = basic_mlp_pallas(x, *params, tile_n=512, use_bf16=False)
    out = jax.block_until_ready(out)
    assert out.shape == (N, out_dim)
    assert jnp.allclose(out, ref, atol=1e-5, rtol=1e-5)

    # Non-divisible batch exercises the pad-and-slice path.
    out_odd = basic_mlp_pallas(x[:777], *params, tile_n=512, use_bf16=False)
    out_odd = jax.block_until_ready(out_odd)
    assert out_odd.shape == (777, out_dim)
    assert jnp.allclose(out_odd, ref[:777], atol=1e-5, rtol=1e-5)

    # bf16 matmul path (f32 accumulation): relaxed tolerance.
    out_bf16 = basic_mlp_pallas(x, *params, tile_n=512, use_bf16=True)
    out_bf16 = jax.block_until_ready(out_bf16)
    assert jnp.allclose(out_bf16, ref, atol=1e-1, rtol=1e-1)

    print("KERNEL_OK")
</pallas_src>

<mosaic_0001>
module attributes {stable_mosaic.version = 11 : i64} {
  func.func @_mlp_kernel(%arg0: i32, %arg1: memref<512x16xf32, #tpu.memory_space<vmem>>, %arg2: memref<16x128xf32, #tpu.memory_space<vmem>>, %arg3: memref<1x128xf32, #tpu.memory_space<vmem>>, %arg4: memref<128x128xf32, #tpu.memory_space<vmem>>, %arg5: memref<1x128xf32, #tpu.memory_space<vmem>>, %arg6: memref<128x3xf32, #tpu.memory_space<vmem>>, %arg7: memref<1x3xf32, #tpu.memory_space<vmem>>, %arg8: memref<512x3xf32, #tpu.memory_space<vmem>>) attributes {dimension_semantics = [#tpu.dimension_semantics<parallel>], iteration_bounds = array<i64: 2>, scalar_prefetch = 0 : i64, scratch_operands = 0 : i64, tpu.core_type = #tpu.core_type<tc>, window_params = [{transform_indices = @transform_0, window_bounds = array<i64: 512, 16>}, {pipeline_mode = #tpu.pipeline_mode<synchronous>, transform_indices = @transform_1, window_bounds = array<i64: 16, 128>}, {pipeline_mode = #tpu.pipeline_mode<synchronous>, transform_indices = @transform_2, window_bounds = array<i64: 1, 128>}, {pipeline_mode = #tpu.pipeline_mode<synchronous>, transform_indices = @transform_3, window_bounds = array<i64: 128, 128>}, {pipeline_mode = #tpu.pipeline_mode<synchronous>, transform_indices = @transform_4, window_bounds = array<i64: 1, 128>}, {pipeline_mode = #tpu.pipeline_mode<synchronous>, transform_indices = @transform_5, window_bounds = array<i64: 128, 3>}, {pipeline_mode = #tpu.pipeline_mode<synchronous>, transform_indices = @transform_6, window_bounds = array<i64: 1, 3>}, {transform_indices = @transform_7, window_bounds = array<i64: 512, 3>}]} {
    %c0 = arith.constant 0 : index
    %c0_0 = arith.constant 0 : index
    %0 = vector.load %arg1[%c0, %c0_0] : memref<512x16xf32, #tpu.memory_space<vmem>>, vector<512x16xf32>
    %c0_1 = arith.constant 0 : index
    %c0_2 = arith.constant 0 : index
    %1 = vector.load %arg2[%c0_1, %c0_2] : memref<16x128xf32, #tpu.memory_space<vmem>>, vector<16x128xf32>
    %cst = arith.constant dense<0.000000e+00> : vector<512x128xf32>
    %2 = tpu.matmul %0, %1, %cst {dimension_numbers = #tpu.dot_dimension_numbers<[1], [0], [0], [1], [0, 0, 1, 1], [], []>} : vector<512x16xf32>, vector<16x128xf32>, vector<512x128xf32> -> vector<512x128xf32>
    %c0_3 = arith.constant 0 : index
    %c0_4 = arith.constant 0 : index
    %3 = vector.load %arg3[%c0_3, %c0_4] : memref<1x128xf32, #tpu.memory_space<vmem>>, vector<1x128xf32>
    %4 = vector.broadcast %3 : vector<1x128xf32> to vector<512x128xf32>
    %5 = arith.addf %2, %4 : vector<512x128xf32>
    %cst_5 = arith.constant 0.000000e+00 : f32
    %6 = vector.broadcast %cst_5 : f32 to vector<512x128xf32>
    %7 = arith.maximumf %5, %6 : vector<512x128xf32>
    %c0_6 = arith.constant 0 : index
    %c0_7 = arith.constant 0 : index
    %8 = vector.load %arg4[%c0_6, %c0_7] : memref<128x128xf32, #tpu.memory_space<vmem>>, vector<128x128xf32>
    %cst_8 = arith.constant dense<0.000000e+00> : vector<512x128xf32>
    %9 = tpu.matmul %7, %8, %cst_8 {dimension_numbers = #tpu.dot_dimension_numbers<[1], [0], [0], [1], [0, 0, 1, 1], [], []>} : vector<512x128xf32>, vector<128x128xf32>, vector<512x128xf32> -> vector<512x128xf32>
    %c0_9 = arith.constant 0 : index
    %c0_10 = arith.constant 0 : index
    %10 = vector.load %arg5[%c0_9, %c0_10] : memref<1x128xf32, #tpu.memory_space<vmem>>, vector<1x128xf32>
    %11 = vector.broadcast %10 : vector<1x128xf32> to vector<512x128xf32>
    %12 = arith.addf %9, %11 : vector<512x128xf32>
    %cst_11 = arith.constant 0.000000e+00 : f32
    %13 = vector.broadcast %cst_11 : f32 to vector<512x128xf32>
    %14 = arith.maximumf %12, %13 : vector<512x128xf32>
    %c0_12 = arith.constant 0 : index
    %c0_13 = arith.constant 0 : index
    %15 = vector.load %arg6[%c0_12, %c0_13] : memref<128x3xf32, #tpu.memory_space<vmem>>, vector<128x3xf32>
    %cst_14 = arith.constant dense<0.000000e+00> : vector<512x3xf32>
    %16 = tpu.matmul %14, %15, %cst_14 {dimension_numbers = #tpu.dot_dimension_numbers<[1], [0], [0], [1], [0, 0, 1, 1], [], []>} : vector<512x128xf32>, vector<128x3xf32>, vector<512x3xf32> -> vector<512x3xf32>
    %c0_15 = arith.constant 0 : index
    %c0_16 = arith.constant 0 : index
    %17 = vector.load %arg7[%c0_15, %c0_16] : memref<1x3xf32, #tpu.memory_space<vmem>>, vector<1x3xf32>
    %18 = vector.broadcast %17 : vector<1x3xf32> to vector<512x3xf32>
    %19 = arith.addf %16, %18 : vector<512x3xf32>
    %c0_17 = arith.constant 0 : index
    %c0_18 = arith.constant 0 : index
    %20 = vector.load %arg8[%c0_17, %c0_18] : memref<512x3xf32, #tpu.memory_space<vmem>>, vector<512x3xf32>
    tpu.vector_store %arg8[%c0_17, %c0_18], %19 {strides = array<i32>} : memref<512x3xf32, #tpu.memory_space<vmem>>, vector<512x3xf32>,
    return
  }
  func.func @transform_0(%arg0: i32) -> (i32, i32) {
    %c0_i32 = arith.constant 0 : i32
    %c0_i32_0 = arith.constant 0 : i32
    return %arg0, %c0_i32 : i32, i32
  }
  func.func @transform_1(%arg0: i32) -> (i32, i32) {
    %c0_i32 = arith.constant 0 : i32
    %c0_i32_0 = arith.constant 0 : i32
    %c0_i32_1 = arith.constant 0 : i32
    return %c0_i32, %c0_i32_0 : i32, i32
  }
  func.func @transform_2(%arg0: i32) -> (i32, i32) {
    %c0_i32 = arith.constant 0 : i32
    %c0_i32_0 = arith.constant 0 : i32
    %c0_i32_1 = arith.constant 0 : i32
    return %c0_i32, %c0_i32_0 : i32, i32
  }
  func.func @transform_3(%arg0: i32) -> (i32, i32) {
    %c0_i32 = arith.constant 0 : i32
    %c0_i32_0 = arith.constant 0 : i32
    %c0_i32_1 = arith.constant 0 : i32
    return %c0_i32, %c0_i32_0 : i32, i32
  }
  func.func @transform_4(%arg0: i32) -> (i32, i32) {
    %c0_i32 = arith.constant 0 : i32
    %c0_i32_0 = arith.constant 0 : i32
    %c0_i32_1 = arith.constant 0 : i32
    return %c0_i32, %c0_i32_0 : i32, i32
  }
  func.func @transform_5(%arg0: i32) -> (i32, i32) {
    %c0_i32 = arith.constant 0 : i32
    %c0_i32_0 = arith.constant 0 : i32
    %c0_i32_1 = arith.constant 0 : i32
    return %c0_i32, %c0_i32_0 : i32, i32
  }
  func.func @transform_6(%arg0: i32) -> (i32, i32) {
    %c0_i32 = arith.constant 0 : i32
    %c0_i32_0 = arith.constant 0 : i32
    %c0_i32_1 = arith.constant 0 : i32
    return %c0_i32, %c0_i32_0 : i32, i32
  }
  func.func @transform_7(%arg0: i32) -> (i32, i32) {
    %c0_i32 = arith.constant 0 : i32
    %c0_i32_0 = arith.constant 0 : i32
    return %arg0, %c0_i32 : i32, i32
  }
}

</mosaic_0001>

<bundles_post_ra>
// kernel: basic_mlp_pallas.1
= control target key start
LH: loop header
LB: loop body
LE: loop exit
PB: predicated region body
PF: predicated region fallthrough
CT: control target
= control target key end

     0   :  { %s2784_s24 = smov 0   ;;  %s3473_s0 = inlined_call_operand.vmem [shape: f32[1024,16], index: 0, kind: input, shape index: {}]   ;;  %s3474_s1 = inlined_call_operand.vmem [shape: f32[16,128], index: 1, kind: input, shape index: {}]   ;;  %s3475_s2 = inlined_call_operand.vmem [shape: f32[1,128], index: 2, kind: input, shape index: {}]   ;;  %s3476_s3 = inlined_call_operand.vmem [shape: f32[128,128], index: 3, kind: input, shape index: {}]   ;;  %s3477_s4 = inlined_call_operand.vmem [shape: f32[1,128], index: 4, kind: input, shape index: {}]   ;;  %s3478_s5 = inlined_call_operand.vmem [shape: f32[128,3], index: 5, kind: input, shape index: {}]   ;;  %s3479_s6 = inlined_call_operand.vmem [shape: f32[1,3], index: 6, kind: input, shape index: {}]   ;;  %s3480_s7 = inlined_call_operand.vmem [shape: f32[1024,3], index: 7, kind: output, shape index: {}]  }
   0x1 LB: > { %s1998_s25 = sadd.s32 4294967295, %s2742_s24   ;;  %p2002_p0 = scmp.ge.s32.totalorder %s2742_s24, 1  ;;  %s2742_s24 = sphi %s2784_s24, %s17_s24  }
   0x2   : > { %p238_p1 = scmp.lt.s32.totalorder %s2742_s24, 3 }
   0x4   : > { %p239_p2 = pnand %p2002_p0, %p238_p1 }
   0x5   : > { %v346_v0 = vld [vmem:[%s3474_s1] sm:$0xff] (!%p239_p2)  ;;  %v347_v1 = vld [vmem:[%s3474_s1 + $0x8] sm:$0xff] (!%p239_p2)  ;;  %s2003_s30 = sshll.u32 (!%p239_p2), %s1998_s25, 6  ;;  %vm355_vm0 = vcmask (!%p239_p2), 130048   ;;  %v999_v12 = vld [vmem:[%s3476_s3 + $0x10] sm:$0xff] (!%p239_p2)  ;;  %vm1877_vm1 = vcmask (!%p239_p2), 23552  }
   0x6   : > { %242 = sbr.rel (%p239_p2) target bundleno = 794 (0x31a), region = 48  ;;  %v997_v2 = vld [vmem:[%s3476_s3] sm:$0xff] (!%p239_p2)  ;;  %v2658_v3 = vpack.c.bf16 (!%p239_p2), %v347_v1, %v346_v0  ;;  %p271_p3 = scmp.lt.s32.totalorder (!%p239_p2), %s2003_s30, 127  ;;  %v998_v4 = vld [vmem:[%s3476_s3 + $0x8] sm:$0xff] (!%p239_p2)  ;;  %v1000_v13 = vld [vmem:[%s3476_s3 + $0x18] sm:$0xff] (!%p239_p2) }
   0x7   : > { %v2662_v5 = vpack.c.bf16 (!%p239_p2), %v998_v4, %v997_v2  ;;  %v2666_v16 = vpack.c.bf16 (!%p239_p2), %v1000_v13, %v999_v12  ;;  %v1001_v17 = vld [vmem:[%s3476_s3 + $0x20] sm:$0xff] (!%p239_p2)  ;;  %v1002_v18 = vld [vmem:[%s3476_s3 + $0x28] sm:$0xff] (!%p239_p2)  ;;  %v1003_v27 = vld [vmem:[%s3476_s3 + $0x30] sm:$0xff] (!%p239_p2) }
   0x8   : > { %2659 = vmatprep.subr.bf16.mxu0 (!%p239_p2), %v2658_v3  ;;  %2726 = vmatprep.subr.bf16.mxu1 (!%p239_p2), %v2658_v3  ;;  %v2670_v25 = vpack.c.bf16 (!%p239_p2), %v1002_v18, %v1001_v17  ;;  %v1004_v28 = vld [vmem:[%s3476_s3 + $0x38] sm:$0xff] (!%p239_p2)  ;;  %v1005_v34 = vld [vmem:[%s3476_s3 + $0x40] sm:$0xff] (!%p239_p2)  ;;  %v1006_v35 = vld [vmem:[%s3476_s3 + $0x48] sm:$0xff] (!%p239_p2) }
   0x9   : > { %2661 = vmatpush3.bf16.msra.mxu0 (!%p239_p2), %v2658_v3  ;;  %2727 = vmatpush3.bf16.msra.mxu1 (!%p239_p2), %v2658_v3  ;;  %v2674_v32 = vpack.c.bf16 (!%p239_p2), %v1004_v28, %v1003_v27  ;;  %v2678_v39 = vpack.c.bf16 (!%p239_p2), %v1006_v35, %v1005_v34  ;;  %v1007_v41 = vld [vmem:[%s3476_s3 + $0x50] sm:$0xff] (!%p239_p2)  ;;  %v1008_v42 = vld [vmem:[%s3476_s3 + $0x58] sm:$0xff] (!%p239_p2)  ;;  %v1009_v48 = vld [vmem:[%s3476_s3 + $0x60] sm:$0xff] (!%p239_p2) }
   0xa   : > { %2663 = vmatprep.subr.bf16.mxu1 (!%p239_p2), %v2662_v5  ;;  %v2682_v46 = vpack.c.bf16 (!%p239_p2), %v1008_v42, %v1007_v41  ;;  %v1010_v49 = vld [vmem:[%s3476_s3 + $0x68] sm:$0xff] (!%p239_p2)  ;;  %v1011_v55 = vld [vmem:[%s3476_s3 + $0x70] sm:$0xff] (!%p239_p2)  ;;  %v1012_v56 = vld [vmem:[%s3476_s3 + $0x78] sm:$0xff] (!%p239_p2) }
   0xb   : > { %v2686_v53 = vpack.c.bf16 (!%p239_p2), %v1010_v49, %v1009_v48  ;;  %v2690_v60 = vpack.c.bf16 (!%p239_p2), %v1012_v56, %v1011_v55  ;;  %v2987_v27 = vld [vmem:[%s3475_s2] ss:$0 sm:$0xff] (!%p239_p2)  ;;  %v1471_v34 = vld [vmem:[%s3478_s5 + $0x10] sm:$0xff] (!%p239_p2) }
   0xd   : > { %s3482_s30 = smov (!%p271_p3, %s2003_s30), 127 }
   0xe   : > { %s2004_s12 = sshll.u32 %s3482_s30, 3 }
   0xf   : > { %s2812_s15 = scalar_lea.vmem %s3473_s0, %s2004_s12  ;;  %s3276_s26 = scalar_lea.vmem %s3480_s7, %s2004_s12 }
  0x10   : > { %v282_v6 = vld [vmem:[%s2812_s15] sm:$0xff]  ;;  %v283_v7 = vld [vmem:[%s2812_s15 + $0x8] sm:$0xff]  ;;  %v284_v8 = vld [vmem:[%s2812_s15 + $0x10] sm:$0xff] }
  0x11   : > { %2306 = vmatprep.mubr.msk.f32.mxu0 %vm355_vm0, %v282_v6  ;;  %v285_v9 = vld [vmem:[%s2812_s15 + $0x18] sm:$0xff]  ;;  %v286_v10 = vld [vmem:[%s2812_s15 + $0x20] sm:$0xff]  ;;  %v287_v11 = vld [vmem:[%s2812_s15 + $0x28] sm:$0xff] }
  0x12   : > { %2307 = vmatmul.mubr.msk.f32.vlgmr.msra.gmra.mrb[0].mxu0 %vm355_vm0, %v283_v7  ;;  %v288_v14 = vld [vmem:[%s2812_s15 + $0x30] sm:$0xff]  ;;  %v314_v15 = vld [vmem:[%s2812_s15 + $0x100] sm:$0xff]  ;;  %v289_v19 = vld [vmem:[%s2812_s15 + $0x38] sm:$0xff] }
  0x13   : > { %2309 = vmatprep.mubr.msk.f32.mxu0 %vm355_vm0, %v284_v8  ;;  %2354 = vmatprep.mubr.msk.f32.mxu1 %vm355_vm0, %v314_v15  ;;  %v315_v20 = vld [vmem:[%s2812_s15 + $0x108] sm:$0xff]  ;;  %v316_v21 = vld [vmem:[%s2812_s15 + $0x110] sm:$0xff]  ;;  %v290_v22 = vld [vmem:[%s2812_s15 + $0x40] sm:$0xff] }
  0x14   : > { %2355 = vmatmul.mubr.msk.f32.vlgmr.msra.gmra.mrb[0].mxu1 %vm355_vm0, %v315_v20  ;;  %v317_v23 = vld [vmem:[%s2812_s15 + $0x118] sm:$0xff]  ;;  %v318_v24 = vld [vmem:[%s2812_s15 + $0x120] sm:$0xff]  ;;  %v291_v26 = vld [vmem:[%s2812_s15 + $0x48] sm:$0xff] }
  0x15   : > { %2357 = vmatprep.mubr.msk.f32.mxu1 %vm355_vm0, %v316_v21  ;;  %2665 = vmatpush3.bf16.msra.mxu1 %v2662_v5  ;;  %v292_v29 = vld [vmem:[%s2812_s15 + $0x50] sm:$0xff]  ;;  %v319_v30 = vld [vmem:[%s2812_s15 + $0x128] sm:$0xff]  ;;  %v293_v33 = vld [vmem:[%s2812_s15 + $0x58] sm:$0xff] }
  0x16   : > { %2310 = vmatmul.mubr.msk.f32.gmra.mrb[2].mxu0 %vm355_vm0, %v285_v9  ;;  %2667 = vmatprep.subr.bf16.mxu1 %v2666_v16  ;;  %v320_v31 = vld [vmem:[%s2812_s15 + $0x130] sm:$0xff]  ;;  %v294_v36 = vld [vmem:[%s2812_s15 + $0x60] sm:$0xff]  ;;  %v321_v37 = vld [vmem:[%s2812_s15 + $0x138] sm:$0xff] }
  0x17   : > { %2312 = vmatprep.mubr.msk.f32.mxu0 %vm355_vm0, %v286_v10  ;;  %v322_v38 = vld [vmem:[%s2812_s15 + $0x140] sm:$0xff]  ;;  %v295_v40 = vld [vmem:[%s2812_s15 + $0x68] sm:$0xff]  ;;  %v296_v43 = vld [vmem:[%s2812_s15 + $0x70] sm:$0xff] }
  0x18   : > { %2358 = vmatmul.mubr.msk.f32.gmra.mrb[2].mxu1 %vm355_vm0, %v317_v23  ;;  %v323_v44 = vld [vmem:[%s2812_s15 + $0x148] sm:$0xff]  ;;  %v324_v45 = vld [vmem:[%s2812_s15 + $0x150] sm:$0xff]  ;;  %v297_v47 = vld [vmem:[%s2812_s15 + $0x78] sm:$0xff] }
  0x19   : > { %2360 = vmatprep.mubr.msk.f32.mxu1 %vm355_vm0, %v318_v24  ;;  %2669 = vmatpush3.bf16.msra.mxu1 %v2666_v16  ;;  %v298_v50 = vld [vmem:[%s2812_s15 + $0x80] sm:$0xff]  ;;  %v325_v51 = vld [vmem:[%s2812_s15 + $0x158] sm:$0xff]  ;;  %v299_v54 = vld [vmem:[%s2812_s15 + $0x88] sm:$0xff] }
  0x1a   : > { %2313 = vmatmul.mubr.msk.f32.gmra.mrb[4].mxu0 %vm355_vm0, %v287_v11  ;;  %2671 = vmatprep.subr.bf16.mxu1 %v2670_v25  ;;  %v326_v52 = vld [vmem:[%s2812_s15 + $0x160] sm:$0xff]  ;;  %v300_v57 = vld [vmem:[%s2812_s15 + $0x90] sm:$0xff]  ;;  %v327_v58 = vld [vmem:[%s2812_s15 + $0x168] sm:$0xff] }
  0x1b   : > { %2315 = vmatprep.mubr.msk.f32.mxu0 %vm355_vm0, %v288_v14  ;;  %v328_v59 = vld [vmem:[%s2812_s15 + $0x170] sm:$0xff]  ;;  %v301_v61 = vld [vmem:[%s2812_s15 + $0x98] sm:$0xff]  ;;  %v302_v62 = vld [vmem:[%s2812_s15 + $0xa0] sm:$0xff] }
  0x1c   : > { %2361 = vmatmul.mubr.msk.f32.gmra.mrb[4].mxu1 %vm355_vm0, %v319_v30  ;;  %v329_v63 = vld [vmem:[%s2812_s15 + $0x178] sm:$0xff]  ;;  %v330_v0 = vld [vmem:[%s2812_s15 + $0x180] sm:$0xff]  ;;  %v303_v1 = vld [vmem:[%s2812_s15 + $0xa8] sm:$0xff] }
  0x1d   : > { %2363 = vmatprep.mubr.msk.f32.mxu1 %vm355_vm0, %v320_v31  ;;  %2673 = vmatpush3.bf16.msra.mxu1 %v2670_v25  ;;  %v304_v2 = vld [vmem:[%s2812_s15 + $0xb0] sm:$0xff]  ;;  %v331_v3 = vld [vmem:[%s2812_s15 + $0x188] sm:$0xff]  ;;  %v305_v5 = vld [vmem:[%s2812_s15 + $0xb8] sm:$0xff] }
  0x1e   : > { %2316 = vmatmul.mubr.msk.f32.gmra.mrb[6].mxu0 %vm355_vm0, %v289_v19  ;;  %2675 = vmatprep.subr.bf16.mxu1 %v2674_v32  ;;  %v332_v4 = vld [vmem:[%s2812_s15 + $0x190] sm:$0xff]  ;;  %v306_v6 = vld [vmem:[%s2812_s15 + $0xc0] sm:$0xff]  ;;  %v333_v7 = vld [vmem:[%s2812_s15 + $0x198] sm:$0xff] }
  0x1f   : > { %2318 = vmatprep.mubr.msk.f32.mxu0 %vm355_vm0, %v290_v22  ;;  %v334_v8 = vld [vmem:[%s2812_s15 + $0x1a0] sm:$0xff]  ;;  %v307_v9 = vld [vmem:[%s2812_s15 + $0xc8] sm:$0xff]  ;;  %v308_v10 = vld [vmem:[%s2812_s15 + $0xd0] sm:$0xff] }
  0x20   : > { %2364 = vmatmul.mubr.msk.f32.gmra.mrb[6].mxu1 %vm355_vm0, %v321_v37  ;;  %v335_v11 = vld [vmem:[%s2812_s15 + $0x1a8] sm:$0xff]  ;;  %v336_v12 = vld [vmem:[%s2812_s15 + $0x1b0] sm:$0xff]  ;;  %v309_v13 = vld [vmem:[%s2812_s15 + $0xd8] sm:$0xff] }
  0x21   : > { %2366 = vmatprep.mubr.msk.f32.mxu1 %vm355_vm0, %v322_v38  ;;  %2677 = vmatpush3.bf16.msra.mxu1 %v2674_v32  ;;  %v310_v14 = vld [vmem:[%s2812_s15 + $0xe0] sm:$0xff]  ;;  %v337_v15 = vld [vmem:[%s2812_s15 + $0x1b8] sm:$0xff]  ;;  %v311_v17 = vld [vmem:[%s2812_s15 + $0xe8] sm:$0xff] }
  0x22   : > { %2319 = vmatmul.mubr.msk.f32.gmra.mrb[8].mxu0 %vm355_vm0, %v291_v26  ;;  %2679 = vmatprep.subr.bf16.mxu1 %v2678_v39  ;;  %v338_v16 = vld [vmem:[%s2812_s15 + $0x1c0] sm:$0xff]  ;;  %v312_v18 = vld [vmem:[%s2812_s15 + $0xf0] sm:$0xff]  ;;  %v339_v19 = vld [vmem:[%s2812_s15 + $0x1c8] sm:$0xff] }
  0x23   : > { %2321 = vmatprep.mubr.msk.f32.mxu0 %vm355_vm0, %v292_v29  ;;  %v340_v20 = vld [vmem:[%s2812_s15 + $0x1d0] sm:$0xff]  ;;  %v313_v21 = vld [vmem:[%s2812_s15 + $0xf8] sm:$0xff]  ;;  %v342_v23 = vld [vmem:[%s2812_s15 + $0x1e0] sm:$0xff] }
  0x24   : > { %2367 = vmatmul.mubr.msk.f32.gmra.mrb[8].mxu1 %vm355_vm0, %v323_v44  ;;  %v341_v22 = vld [vmem:[%s2812_s15 + $0x1d8] sm:$0xff]  ;;  %v343_v24 = vld [vmem:[%s2812_s15 + $0x1e8] sm:$0xff]  ;;  %v344_v25 = vld [vmem:[%s2812_s15 + $0x1f0] sm:$0xff] }
  0x25   : > { %2369 = vmatprep.mubr.msk.f32.mxu1 %vm355_vm0, %v324_v45  ;;  %2681 = vmatpush3.bf16.msra.mxu1 %v2678_v39  ;;  %v345_v26 = vld [vmem:[%s2812_s15 + $0x1f8] sm:$0xff]  ;;  %v1469_v32 = vld [vmem:[%s3478_s5] sm:$0xff]  ;;  %v1474_v44 = vld [vmem:[%s3478_s5 + $0x28] sm:$0xff] }
  0x26   : > { %2322 = vmatmul.mubr.msk.f32.gmra.mrb[10].mxu0 %vm355_vm0, %v293_v33  ;;  %2683 = vmatprep.subr.bf16.mxu1 %v2682_v46  ;;  %v1470_v33 = vld [vmem:[%s3478_s5 + $0x8] sm:$0xff]  ;;  %v1472_v38 = vld [vmem:[%s3478_s5 + $0x18] sm:$0xff] }
  0x27   : > { %2324 = vmatprep.mubr.msk.f32.mxu0 %vm355_vm0, %v294_v36  ;;  %v2694_v37 = vpack.c.bf16 %v1470_v33, %v1469_v32  ;;  %v2698_v42 = vpack.c.bf16 %v1472_v38, %v1471_v34  ;;  %v1483_v33 = vld [vmem:[%s3478_s5 + $0x70] sm:$0xff]  ;;  %v1484_v34 = vld [vmem:[%s3478_s5 + $0x78] sm:$0xff] }
  0x28   : > { %2370 = vmatmul.mubr.msk.f32.gmra.mrb[10].mxu1 %vm355_vm0, %v325_v51 }
  0x29   : > { %2372 = vmatprep.mubr.msk.f32.mxu1 %vm355_vm0, %v326_v52  ;;  %2685 = vmatpush3.bf16.msra.mxu1 %v2682_v46  ;;  %v1475_v52 = vld [vmem:[%s3478_s5 + $0x30] sm:$0xff] }
  0x2a   : > { %2325 = vmatmul.mubr.msk.f32.gmra.mrb[12].mxu0 %vm355_vm0, %v295_v40  ;;  %2687 = vmatprep.subr.bf16.mxu1 %v2686_v53 }
  0x2b   : > { %2327 = vmatprep.mubr.msk.f32.mxu0 %vm355_vm0, %v296_v43  ;;  %v1473_v43 = vld [vmem:[%s3478_s5 + $0x20] sm:$0xff]  ;;  %2695 = vmatprep.subr.bf16.mxu0 %v2694_v37 }
  0x2c   : > { %2373 = vmatmul.mubr.msk.f32.gmra.mrb[12].mxu1 %vm355_vm0, %v327_v58  ;;  %2697 = vmatpush3.bf16.msra.mxu0 %v2694_v37  ;;  %v2702_v48 = vpack.c.bf16 %v1474_v44, %v1473_v43 }
  0x2d   : > { %2375 = vmatprep.mubr.msk.f32.mxu1 %vm355_vm0, %v328_v59  ;;  %2689 = vmatpush3.bf16.msra.mxu1 %v2686_v53  ;;  %v1476_v53 = vld [vmem:[%s3478_s5 + $0x38] sm:$0xff] }
  0x2e   : > { %2328 = vmatmul.mubr.msk.f32.gmra.mrb[14].mxu0 %vm355_vm0, %v297_v47  ;;  %2691 = vmatprep.subr.bf16.mxu1 %v2690_v60  ;;  %v2706_v59 = vpack.c.bf16 %v1476_v53, %v1475_v52 }
  0x2f   : > { %2330 = vmatprep.mubr.msk.f32.mxu0 %vm355_vm0, %v298_v50  ;;  %2699 = vmatprep.subr.bf16.mxu0 %v2698_v42 }
  0x30   : > { %2376 = vmatmul.mubr.msk.f32.gmra.mrb[14].mxu1 %vm355_vm0, %v329_v63  ;;  %2701 = vmatpush3.bf16.msra.mxu0 %v2698_v42  ;;  %v1477_v63 = vld [vmem:[%s3478_s5 + $0x40] sm:$0xff] }
  0x31   : > { %2378 = vmatprep.mubr.msk.f32.mxu1 %vm355_vm0, %v330_v0  ;;  %2693 = vmatpush3.bf16.msra.mxu1 %v2690_v60  ;;  %v1478_v0 = vld [vmem:[%s3478_s5 + $0x48] sm:$0xff] }
  0x32   : > { %2331 = vmatmul.mubr.msk.f32.gmra.mrb[16].mxu0 %vm355_vm0, %v299_v54  ;;  %2703 = vmatprep.subr.bf16.mxu0 %v2702_v48 }
  0x33   : > { %2333 = vmatprep.mubr.msk.f32.mxu0 %vm355_vm0, %v300_v57 }
  0x34   : > { %2379 = vmatmul.mubr.msk.f32.gmra.mrb[16].mxu1 %vm355_vm0, %v331_v3  ;;  %2705 = vmatpush3.bf16.msra.mxu0 %v2702_v48 }
  0x35   : > { %2381 = vmatprep.mubr.msk.f32.mxu1 %vm355_vm0, %v332_v4  ;;  %2707 = vmatprep.subr.bf16.mxu0 %v2706_v59 }
  0x36   : > { %2334 = vmatmul.mubr.msk.f32.gmra.mrb[18].mxu0 %vm355_vm0, %v301_v61 }
  0x37   : > { %2336 = vmatprep.mubr.msk.f32.mxu0 %vm355_vm0, %v302_v62 }
  0x38   : > { %2382 = vmatmul.mubr.msk.f32.gmra.mrb[18].mxu1 %vm355_vm0, %v333_v7  ;;  %2709 = vmatpush3.bf16.msra.mxu0 %v2706_v59 }
  0x39   : > { %2384 = vmatprep.mubr.msk.f32.mxu1 %vm355_vm0, %v334_v8 }
  0x3a   : > { %2337 = vmatmul.mubr.msk.f32.gmra.mrb[20].mxu0 %vm355_vm0, %v303_v1 }
  0x3b   : > { %2339 = vmatprep.mubr.msk.f32.mxu0 %vm355_vm0, %v304_v2 }
  0x3c   : > { %2385 = vmatmul.mubr.msk.f32.gmra.mrb[20].mxu1 %vm355_vm0, %v335_v11  ;;  %v1480_v11 = vld [vmem:[%s3478_s5 + $0x58] sm:$0xff] }
  0x3d   : > { %2387 = vmatprep.mubr.msk.f32.mxu1 %vm355_vm0, %v336_v12 }
  0x3e   : > { %2340 = vmatmul.mubr.msk.f32.gmra.mrb[22].mxu0 %vm355_vm0, %v305_v5 }
  0x3f   : > { %2342 = vmatprep.mubr.msk.f32.mxu0 %vm355_vm0, %v306_v6  ;;  %v2710_v6 = vpack.c.bf16 %v1478_v0, %v1477_v63 }
  0x40   : > { %2388 = vmatmul.mubr.msk.f32.gmra.mrb[22].mxu1 %vm355_vm0, %v337_v15 }
  0x41   : > { %2390 = vmatprep.mubr.msk.f32.mxu1 %vm355_vm0, %v338_v16  ;;  %2711 = vmatprep.subr.bf16.mxu0 %v2710_v6 }
  0x42   : > { %2343 = vmatmul.mubr.msk.f32.gmra.mrb[24].mxu0 %vm355_vm0, %v307_v9 }
  0x43   : > { %2345 = vmatprep.mubr.msk.f32.mxu0 %vm355_vm0, %v308_v10  ;;  %v1479_v10 = vld [vmem:[%s3478_s5 + $0x50] sm:$0xff]  ;;  %2713 = vmatpush3.bf16.msra.mxu0 %v2710_v6 }
  0x44   : > { %2391 = vmatmul.mubr.msk.f32.gmra.mrb[24].mxu1 %vm355_vm0, %v339_v19 }
  0x45   : > { %2393 = vmatprep.mubr.msk.f32.mxu1 %vm355_vm0, %v340_v20 }
  0x46   : > { %2346 = vmatmul.mubr.msk.f32.gmra.mrb[26].mxu0 %vm355_vm0, %v309_v13 }
  0x47   : > { %2348 = vmatprep.mubr.msk.f32.mxu0 %vm355_vm0, %v310_v14 }
  0x48   : > { %2394 = vmatmul.mubr.msk.f32.gmra.mrb[26].mxu1 %vm355_vm0, %v341_v22  ;;  %v1482_v22 = vld [vmem:[%s3478_s5 + $0x68] sm:$0xff] }
  0x49   : > { %2396 = vmatprep.mubr.msk.f32.mxu1 %vm355_vm0, %v342_v23 }
  0x4a   : > { %2349 = vmatmul.mubr.msk.f32.gmra.mrb[28].mxu0 %vm355_vm0, %v311_v17  ;;  %v2714_v17 = vpack.c.bf16 %v1480_v11, %v1479_v10 }
  0x4b   : > { %2351 = vmatprep.mubr.msk.f32.mxu0 %vm355_vm0, %v312_v18 }
  0x4c   : > { %2397 = vmatmul.mubr.msk.f32.gmra.mrb[28].mxu1 %vm355_vm0, %v343_v24  ;;  %2715 = vmatprep.subr.bf16.mxu0 %v2714_v17 }
  0x4d   : > { %2399 = vmatprep.mubr.msk.f32.mxu1 %vm355_vm0, %v344_v25  ;;  %2717 = vmatpush3.bf16.msra.mxu0 %v2714_v17 }
  0x4e   : > { %2352 = vmatmul.mubr.msk.f32.gmra.mrb[30].mxu0 %vm355_vm0, %v313_v21  ;;  %v1481_v21 = vld [vmem:[%s3478_s5 + $0x60] sm:$0xff] }
  0x50   : > { %2400 = vmatmul.mubr.msk.f32.gmra.mrb[30].mxu1 %vm355_vm0, %v345_v26 }
  0xe5   : > { %v2308_v28 = vpop.f32.mrb[0].mxu0 }
  0xe6   : > { %v620_v29 = vadd.f32 %v2308_v28, %v2987_v27  ;;  %v614_v30 = vpop.f32.mrb[1].mxu0 }
  0xe7   : > { %v615_v31 = vadd.f32 %v2987_v27, %v614_v30  ;;  %v3019_v55 = vpop.f32.mrb[0].mxu1 }
  0xe8   : > { %v934_v39 = vmax.f32 %v620_v29, 0.0  ;;  %v3021_v56 = vpop.f32.mrb[1].mxu1  ;;  %v2718_v29 = vpack.c.bf16 %v1482_v22, %v1481_v21 }
  0xe9   : > { %v933_v35 = vmax.f32 %v615_v31, 0.0  ;;  %v2311_v36 = vpop.f32.mrb[2].mxu0 }
  0xea   : > { %v630_v40 = vadd.f32 %v2311_v36, %v2987_v27  ;;  %v624_v41 = vpop.f32.mrb[3].mxu0  ;;  %2719 = vmatprep.subr.bf16.mxu0 %v2718_v29 }
  0xeb   : > { %v625_v45 = vadd.f32 %v2987_v27, %v624_v41  ;;  %2434 = vmatprep.mubr.f32.mxu1 %v933_v35  ;;  %v3031_v2 = vpop.f32.mrb[2].mxu1  ;;  %2721 = vmatpush3.bf16.msra.mxu0 %v2718_v29 }
  0xec   : > { %2435 = vmatmul.mubr.f32.vlgmr.msra.gmra.mrb[32].mxu1 %v934_v39  ;;  %v936_v49 = vmax.f32 %v630_v40, 0.0  ;;  %v3033_v3 = vpop.f32.mrb[3].mxu1  ;;  %v2722_v40 = vpack.c.bf16 %v1484_v34, %v1483_v33 }
  0xed   : > { %v935_v46 = vmax.f32 %v625_v45, 0.0  ;;  %v2314_v47 = vpop.f32.mrb[4].mxu0 }
  0xee   : > { %v640_v50 = vadd.f32 %v2314_v47, %v2987_v27  ;;  %v634_v51 = vpop.f32.mrb[5].mxu0  ;;  %2723 = vmatprep.subr.bf16.mxu0 %v2722_v40 }
  0xef   : > { %v635_v54 = vadd.f32 %v2987_v27, %v634_v51  ;;  %2437 = vmatprep.mubr.f32.mxu1 %v935_v46  ;;  %v3043_v13 = vpop.f32.mrb[4].mxu1  ;;  %2725 = vmatpush3.bf16.msra.mxu0 %v2722_v40 }
  0xf0   : > { %2438 = vmatmul.mubr.f32.gmra.mrb[34].mxu1 %v936_v49  ;;  %v938_v60 = vmax.f32 %v640_v50, 0.0  ;;  %v3045_v14 = vpop.f32.mrb[5].mxu1 }
  0xf1   : > { %v937_v57 = vmax.f32 %v635_v54, 0.0  ;;  %v2317_v58 = vpop.f32.mrb[6].mxu0 }
  0xf2   : > { %v650_v61 = vadd.f32 %v2317_v58, %v2987_v27  ;;  %v644_v62 = vpop.f32.mrb[7].mxu0 }
  0xf3   : > { %v645_v1 = vadd.f32 %v2987_v27, %v644_v62  ;;  %2440 = vmatprep.mubr.f32.mxu1 %v937_v57  ;;  %v3055_v24 = vpop.f32.mrb[6].mxu1 }
  0xf4   : > { %2441 = vmatmul.mubr.f32.gmra.mrb[36].mxu1 %v938_v60  ;;  %v940_v7 = vmax.f32 %v650_v61, 0.0  ;;  %v3057_v25 = vpop.f32.mrb[7].mxu1 }
  0xf5   : > { %v939_v4 = vmax.f32 %v645_v1, 0.0  ;;  %v2320_v5 = vpop.f32.mrb[8].mxu0 }
  0xf6   : > { %v660_v8 = vadd.f32 %v2320_v5, %v2987_v27  ;;  %v654_v9 = vpop.f32.mrb[9].mxu0 }
  0xf7   : > { %v655_v12 = vadd.f32 %v2987_v27, %v654_v9  ;;  %2443 = vmatprep.mubr.f32.mxu1 %v939_v4  ;;  %v3067_v36 = vpop.f32.mrb[8].mxu1 }
  0xf8   : > { %2444 = vmatmul.mubr.f32.gmra.mrb[38].mxu1 %v940_v7  ;;  %v942_v18 = vmax.f32 %v660_v8, 0.0  ;;  %v3069_v37 = vpop.f32.mrb[9].mxu1 }
  0xf9   : > { %v941_v15 = vmax.f32 %v655_v12, 0.0  ;;  %v2323_v16 = vpop.f32.mrb[10].mxu0 }
  0xfa   : > { %v670_v19 = vadd.f32 %v2323_v16, %v2987_v27  ;;  %v664_v20 = vpop.f32.mrb[11].mxu0 }
  0xfb   : > { %v665_v23 = vadd.f32 %v2987_v27, %v664_v20  ;;  %2446 = vmatprep.mubr.f32.mxu1 %v941_v15  ;;  %v3073_v45 = vpop.f32.mrb[10].mxu1 }
  0xfc   : > { %2447 = vmatmul.mubr.f32.gmra.mrb[40].mxu1 %v942_v18  ;;  %v944_v30 = vmax.f32 %v670_v19, 0.0  ;;  %v3075_v46 = vpop.f32.mrb[11].mxu1 }
  0xfd   : > { %v943_v26 = vmax.f32 %v665_v23, 0.0  ;;  %v2326_v28 = vpop.f32.mrb[12].mxu0 }
  0xfe   : > { %v680_v31 = vadd.f32 %v2326_v28, %v2987_v27  ;;  %v674_v32 = vpop.f32.mrb[13].mxu0 }
  0xff   : > { %v675_v35 = vadd.f32 %v2987_v27, %v674_v32  ;;  %2449 = vmatprep.mubr.f32.mxu1 %v943_v26  ;;  %v3079_v53 = vpop.f32.mrb[12].mxu1 }
 0x100   : > { %2450 = vmatmul.mubr.f32.gmra.mrb[42].mxu1 %v944_v30  ;;  %v946_v41 = vmax.f32 %v680_v31, 0.0  ;;  %v3081_v54 = vpop.f32.mrb[13].mxu1 }
 0x101   : > { %v945_v38 = vmax.f32 %v675_v35, 0.0  ;;  %v2329_v39 = vpop.f32.mrb[14].mxu0 }
 0x102   : > { %v690_v42 = vadd.f32 %v2329_v39, %v2987_v27  ;;  %v684_v43 = vpop.f32.mrb[15].mxu0 }
 0x103   : > { %v685_v44 = vadd.f32 %v2987_v27, %v684_v43  ;;  %2452 = vmatprep.mubr.f32.mxu1 %v945_v38  ;;  %v3085_v63 = vpop.f32.mrb[14].mxu1 }
 0x104   : > { %2453 = vmatmul.mubr.f32.gmra.mrb[44].mxu1 %v946_v41  ;;  %v948_v49 = vmax.f32 %v690_v42, 0.0  ;;  %v3087_v0 = vpop.f32.mrb[15].mxu1 }
 0x105   : > { %v947_v47 = vmax.f32 %v685_v44, 0.0  ;;  %v2332_v48 = vpop.f32.mrb[16].mxu0 }
 0x106   : > { %v700_v50 = vadd.f32 %v2332_v48, %v2987_v27  ;;  %v694_v51 = vpop.f32.mrb[17].mxu0 }
 0x107   : > { %v695_v52 = vadd.f32 %v2987_v27, %v694_v51  ;;  %2455 = vmatprep.mubr.f32.mxu1 %v947_v47  ;;  %v3091_v9 = vpop.f32.mrb[16].mxu1 }
 0x108   : > { %2456 = vmatmul.mubr.f32.gmra.mrb[46].mxu1 %v948_v49  ;;  %v950_v59 = vmax.f32 %v700_v50, 0.0  ;;  %v3093_v10 = vpop.f32.mrb[17].mxu1 }
 0x109   : > { %v949_v57 = vmax.f32 %v695_v52, 0.0  ;;  %v2335_v58 = vpop.f32.mrb[18].mxu0 }
 0x10a   : > { %v710_v60 = vadd.f32 %v2335_v58, %v2987_v27  ;;  %v704_v61 = vpop.f32.mrb[19].mxu0  ;;  %v775_v58 = vadd.f32 %v2987_v27, %v3021_v56  ;;  %v780_v56 = vadd.f32 %v3019_v55, %v2987_v27 }
 0x10b   : > { %v705_v62 = vadd.f32 %v2987_v27, %v704_v61  ;;  %2458 = vmatprep.mubr.f32.mxu1 %v949_v57  ;;  %v3097_v19 = vpop.f32.mrb[18].mxu1 }
 0x10c   : > { %2459 = vmatmul.mubr.f32.gmra.mrb[48].mxu1 %v950_v59  ;;  %v952_v5 = vmax.f32 %v710_v60, 0.0  ;;  %v3099_v20 = vpop.f32.mrb[19].mxu1 }
 0x10d   : > { %v951_v1 = vmax.f32 %v705_v62, 0.0  ;;  %v2338_v4 = vpop.f32.mrb[20].mxu0 }
 0x10e   : > { %v720_v6 = vadd.f32 %v2338_v4, %v2987_v27  ;;  %v714_v7 = vpop.f32.mrb[21].mxu0 }
 0x10f   : > { %v715_v8 = vadd.f32 %v2987_v27, %v714_v7  ;;  %2461 = vmatprep.mubr.f32.mxu1 %v951_v1  ;;  %v3103_v30 = vpop.f32.mrb[20].mxu1  ;;  %v785_v7 = vadd.f32 %v2987_v27, %v3033_v3 }
 0x110   : > { %2462 = vmatmul.mubr.f32.gmra.mrb[50].mxu1 %v952_v5  ;;  %v954_v15 = vmax.f32 %v720_v6, 0.0  ;;  %v3105_v31 = vpop.f32.mrb[21].mxu1  ;;  %v965_v6 = vmax.f32 %v775_v58, 0.0 }
 0x111   : > { %v953_v11 = vmax.f32 %v715_v8, 0.0  ;;  %v2341_v12 = vpop.f32.mrb[22].mxu0 }
 0x112   : > { %v730_v16 = vadd.f32 %v2341_v12, %v2987_v27  ;;  %v724_v17 = vpop.f32.mrb[23].mxu0 }
 0x113   : > { %v725_v18 = vadd.f32 %v2987_v27, %v724_v17  ;;  %2464 = vmatprep.mubr.f32.mxu1 %v953_v11  ;;  %v3109_v40 = vpop.f32.mrb[22].mxu1  ;;  %v966_v17 = vmax.f32 %v780_v56, 0.0 }
 0x114   : > { %2465 = vmatmul.mubr.f32.gmra.mrb[52].mxu1 %v954_v15  ;;  %v956_v23 = vmax.f32 %v730_v16, 0.0  ;;  %v3111_v41 = vpop.f32.mrb[23].mxu1  ;;  %v967_v15 = vmax.f32 %v785_v7, 0.0  ;;  %v795_v16 = vadd.f32 %v2987_v27, %v3045_v14 }
 0x115   : > { %v955_v21 = vmax.f32 %v725_v18, 0.0  ;;  %v2344_v22 = vpop.f32.mrb[24].mxu0  ;;  %v790_v18 = vadd.f32 %v3031_v2, %v2987_v27  ;;  %v815_v2 = vadd.f32 %v2987_v27, %v3069_v37  ;;  %v835_v37 = vadd.f32 %v2987_v27, %v3081_v54 }
 0x116   : > { %v740_v26 = vadd.f32 %v2344_v22, %v2987_v27  ;;  %v734_v28 = vpop.f32.mrb[25].mxu0  ;;  %v969_v55 = vmax.f32 %v795_v16, 0.0  ;;  %v805_v22 = vadd.f32 %v2987_v27, %v3057_v25  ;;  %v825_v25 = vadd.f32 %v2987_v27, %v3075_v46 }
 0x117   : > { %v735_v29 = vadd.f32 %v2987_v27, %v734_v28  ;;  %2467 = vmatprep.mubr.f32.mxu1 %v955_v21  ;;  %v3115_v50 = vpop.f32.mrb[24].mxu1  ;;  %v845_v46 = vadd.f32 %v2987_v27, %v3087_v0  ;;  %v855_v54 = vadd.f32 %v2987_v27, %v3093_v10  ;;  %v865_v0 = vadd.f32 %v2987_v27, %v3099_v20 }
 0x118   : > { %2468 = vmatmul.mubr.f32.gmra.mrb[54].mxu1 %v956_v23  ;;  %v958_v34 = vmax.f32 %v740_v26, 0.0  ;;  %v3117_v51 = vpop.f32.mrb[25].mxu1  ;;  %v968_v23 = vmax.f32 %v790_v18, 0.0  ;;  %v800_v26 = vadd.f32 %v3043_v13, %v2987_v27  ;;  %v971_v14 = vmax.f32 %v805_v22, 0.0 }
 0x119   : > { %v957_v32 = vmax.f32 %v735_v29, 0.0  ;;  %v2347_v33 = vpop.f32.mrb[26].mxu0  ;;  %v810_v29 = vadd.f32 %v3055_v24, %v2987_v27  ;;  %v820_v13 = vadd.f32 %v3067_v36, %v2987_v27  ;;  %v830_v24 = vadd.f32 %v3073_v45, %v2987_v27 }
 0x11a   : > { %v750_v35 = vadd.f32 %v2347_v33, %v2987_v27  ;;  %v744_v38 = vpop.f32.mrb[27].mxu0  ;;  %v970_v28 = vmax.f32 %v800_v26, 0.0  ;;  %v840_v36 = vadd.f32 %v3079_v53, %v2987_v27  ;;  %v850_v45 = vadd.f32 %v3085_v63, %v2987_v27 }
 0x11b   : > { %v745_v39 = vadd.f32 %v2987_v27, %v744_v38  ;;  %2470 = vmatprep.mubr.f32.mxu1 %v957_v32  ;;  %v3123_v1 = vpop.f32.mrb[26].mxu1  ;;  %v973_v32 = vmax.f32 %v815_v2, 0.0  ;;  %v972_v33 = vmax.f32 %v810_v29, 0.0  ;;  %v977_v38 = vmax.f32 %v835_v37, 0.0 }
 0x11c   : > { %2471 = vmatmul.mubr.f32.gmra.mrb[56].mxu1 %v958_v34  ;;  %v960_v44 = vmax.f32 %v750_v35, 0.0  ;;  %v3125_v4 = vpop.f32.mrb[27].mxu1  ;;  %v975_v34 = vmax.f32 %v825_v25, 0.0  ;;  %v974_v35 = vmax.f32 %v820_v13, 0.0  ;;  %v860_v53 = vadd.f32 %v3091_v9, %v2987_v27 }
 0x11d   : > { %v959_v42 = vmax.f32 %v745_v39, 0.0  ;;  %v2350_v43 = vpop.f32.mrb[28].mxu0  ;;  %v976_v39 = vmax.f32 %v830_v24, 0.0  ;;  %v875_v10 = vadd.f32 %v2987_v27, %v3105_v31  ;;  %v870_v63 = vadd.f32 %v3097_v19, %v2987_v27 }
 0x11e   : > { %v760_v47 = vadd.f32 %v2350_v43, %v2987_v27  ;;  %v754_v48 = vpop.f32.mrb[29].mxu0  ;;  %v978_v43 = vmax.f32 %v840_v36, 0.0  ;;  %v885_v20 = vadd.f32 %v2987_v27, %v3111_v41  ;;  %v880_v9 = vadd.f32 %v3103_v30, %v2987_v27 }
 0x11f   : > { %v755_v49 = vadd.f32 %v2987_v27, %v754_v48  ;;  %2473 = vmatprep.mubr.f32.mxu1 %v959_v42  ;;  %v3131_v11 = vpop.f32.mrb[28].mxu1  ;;  %v979_v42 = vmax.f32 %v845_v46, 0.0  ;;  %v983_v48 = vmax.f32 %v865_v0, 0.0  ;;  %v895_v31 = vadd.f32 %v2987_v27, %v3117_v51 }
 0x120   : > { %2474 = vmatmul.mubr.f32.gmra.mrb[58].mxu1 %v960_v44  ;;  %v962_v59 = vmax.f32 %v760_v47, 0.0  ;;  %v3133_v12 = vpop.f32.mrb[29].mxu1  ;;  %v981_v44 = vmax.f32 %v855_v54, 0.0  ;;  %v980_v47 = vmax.f32 %v850_v45, 0.0  ;;  %v987_v58 = vmax.f32 %v885_v20, 0.0 }
 0x121   : > { %v961_v52 = vmax.f32 %v755_v49, 0.0  ;;  %v2353_v57 = vpop.f32.mrb[30].mxu0  ;;  %v982_v49 = vmax.f32 %v860_v53, 0.0  ;;  %v890_v19 = vadd.f32 %v3109_v40, %v2987_v27  ;;  %v905_v41 = vadd.f32 %v2987_v27, %v3125_v4 }
 0x122   : > { %v770_v60 = vadd.f32 %v2353_v57, %v2987_v27  ;;  %v764_v61 = vpop.f32.mrb[31].mxu0  ;;  %v984_v57 = vmax.f32 %v870_v63, 0.0  ;;  %v900_v30 = vadd.f32 %v3115_v50, %v2987_v27  ;;  %v915_v51 = vadd.f32 %v2987_v27, %v3133_v12 }
 0x123   : > { %v765_v62 = vadd.f32 %v2987_v27, %v764_v61  ;;  %2476 = vmatprep.mubr.f32.mxu1 %v961_v52  ;;  %v3139_v3 = vpop.f32.mrb[30].mxu1  ;;  %v985_v52 = vmax.f32 %v875_v10, 0.0  ;;  %v988_v61 = vmax.f32 %v890_v19, 0.0  ;;  %v910_v40 = vadd.f32 %v3123_v1, %v2987_v27 }
 0x124   : > { %2477 = vmatmul.mubr.f32.gmra.mrb[60].mxu1 %v962_v59  ;;  %v964_v8 = vmax.f32 %v770_v60, 0.0  ;;  %v3141_v21 = vpop.f32.mrb[31].mxu1  ;;  %v986_v59 = vmax.f32 %v880_v9, 0.0  ;;  %v989_v60 = vmax.f32 %v895_v31, 0.0  ;;  %v920_v50 = vadd.f32 %v3131_v11, %v2987_v27 }
 0x125   : > { %v963_v5 = vmax.f32 %v765_v62, 0.0  ;;  %v991_v62 = vmax.f32 %v905_v41, 0.0  ;;  %v925_v4 = vadd.f32 %v2987_v27, %v3141_v21  ;;  %v992_v7 = vmax.f32 %v910_v40, 0.0 }
 0x126   : > { %v994_v56 = vmax.f32 %v920_v50, 0.0  ;;  %v930_v12 = vadd.f32 %v3139_v3, %v2987_v27 }
 0x127   : > { %2479 = vmatprep.mubr.f32.mxu1 %v963_v5  ;;  %v990_v5 = vmax.f32 %v900_v30, 0.0 }
 0x128   : > { %2480 = vmatmul.mubr.f32.gmra.mrb[62].mxu1 %v964_v8  ;;  %v995_v8 = vmax.f32 %v925_v4, 0.0  ;;  %v996_v1 = vmax.f32 %v930_v12, 0.0 }
 0x129   : > { %2482 = vmatprep.mubr.f32.mxu1 %v965_v6  ;;  %v993_v6 = vmax.f32 %v915_v51, 0.0 }
 0x12c   : > { %2483 = vmatmul.mubr.f32.gmra.mrb[64].mxu1 %v966_v17 }
 0x12d   : > { %2485 = vmatprep.mubr.f32.mxu1 %v967_v15  ;;  %v3200_v15 = vld [vmem:[%s3477_s4] ss:$0 sm:$0xff] }
 0x130   : > { %2486 = vmatmul.mubr.f32.gmra.mrb[66].mxu1 %v968_v23 }
 0x131   : > { %2488 = vmatprep.mubr.f32.mxu1 %v969_v55 }
 0x134   : > { %2489 = vmatmul.mubr.f32.gmra.mrb[68].mxu1 %v970_v28 }
 0x135   : > { %2491 = vmatprep.mubr.f32.mxu1 %v971_v14 }
 0x138   : > { %2492 = vmatmul.mubr.f32.gmra.mrb[70].mxu1 %v972_v33 }
 0x139   : > { %2494 = vmatprep.mubr.f32.mxu1 %v973_v32 }
 0x13c   : > { %2495 = vmatmul.mubr.f32.gmra.mrb[72].mxu1 %v974_v35 }
 0x13d   : > { %2497 = vmatprep.mubr.f32.mxu1 %v975_v34 }
 0x140   : > { %2498 = vmatmul.mubr.f32.gmra.mrb[74].mxu1 %v976_v39 }
 0x141   : > { %2500 = vmatprep.mubr.f32.mxu1 %v977_v38 }
 0x144   : > { %2501 = vmatmul.mubr.f32.gmra.mrb[76].mxu1 %v978_v43 }
 0x145   : > { %2503 = vmatprep.mubr.f32.mxu1 %v979_v42 }
 0x148   : > { %2504 = vmatmul.mubr.f32.gmra.mrb[78].mxu1 %v980_v47 }
 0x149   : > { %2506 = vmatprep.mubr.f32.mxu1 %v981_v44 }
 0x14c   : > { %2507 = vmatmul.mubr.f32.gmra.mrb[80].mxu1 %v982_v49 }
 0x14d   : > { %2509 = vmatprep.mubr.f32.mxu1 %v983_v48 }
 0x150   : > { %2510 = vmatmul.mubr.f32.gmra.mrb[82].mxu1 %v984_v57 }
 0x151   : > { %2512 = vmatprep.mubr.f32.mxu1 %v985_v52 }
 0x154   : > { %2513 = vmatmul.mubr.f32.gmra.mrb[84].mxu1 %v986_v59 }
 0x155   : > { %2515 = vmatprep.mubr.f32.mxu1 %v987_v58 }
 0x158   : > { %2516 = vmatmul.mubr.f32.gmra.mrb[86].mxu1 %v988_v61 }
 0x159   : > { %2518 = vmatprep.mubr.f32.mxu1 %v989_v60 }
 0x15c   : > { %2519 = vmatmul.mubr.f32.gmra.mrb[88].mxu1 %v990_v5 }
 0x15d   : > { %2521 = vmatprep.mubr.f32.mxu1 %v991_v62 }
 0x160   : > { %2522 = vmatmul.mubr.f32.gmra.mrb[90].mxu1 %v992_v7 }
 0x161   : > { %2524 = vmatprep.mubr.f32.mxu1 %v993_v6 }
 0x164   : > { %2525 = vmatmul.mubr.f32.gmra.mrb[92].mxu1 %v994_v56 }
 0x165   : > { %2527 = vmatprep.mubr.f32.mxu1 %v995_v8 }
 0x168   : > { %2528 = vmatmul.mubr.f32.gmra.mrb[94].mxu1 %v996_v1 }
 0x1bf   : > { %v2436_v16 = vpop.f32.mrb[32].mxu1 }
 0x1c0   : > { %v1092_v17 = vadd.f32 %v2436_v16, %v3200_v15  ;;  %v1086_v11 = vpop.f32.mrb[33].mxu1 }
 0x1c1   : > { %v1087_v18 = vadd.f32 %v3200_v15, %v1086_v11 }
 0x1c2   : > { %v1406_v22 = vmax.f32 %v1092_v17, 0.0 }
 0x1c3   : > { %v1405_v21 = vmax.f32 %v1087_v18, 0.0  ;;  %v2439_v55 = vpop.f32.mrb[34].mxu1 }
 0x1c4   : > { %v1102_v27 = vadd.f32 %v2439_v55, %v3200_v15  ;;  %v1096_v3 = vpop.f32.mrb[35].mxu1 }
 0x1c5   : > { %v1097_v23 = vadd.f32 %v3200_v15, %v1096_v3  ;;  %2562 = vmatprep.mubr.f32.mxu0 %v1405_v21 }
 0x1c6   : > { %2563 = vmatmul.mubr.f32.vlgmr.msra.gmra.mrb[32].mxu0 %v1406_v22  ;;  %v1408_v2 = vmax.f32 %v1102_v27, 0.0 }
 0x1c7   : > { %v1407_v26 = vmax.f32 %v1097_v23, 0.0  ;;  %v2442_v14 = vpop.f32.mrb[36].mxu1 }
 0x1c8   : > { %v1112_v28 = vadd.f32 %v2442_v14, %v3200_v15  ;;  %v1106_v29 = vpop.f32.mrb[37].mxu1 }
 0x1c9   : > { %v1107_v32 = vadd.f32 %v3200_v15, %v1106_v29  ;;  %2565 = vmatprep.mubr.f32.mxu0 %v1407_v26 }
 0x1ca   : > { %2566 = vmatmul.mubr.f32.gmra.mrb[34].mxu0 %v1408_v2  ;;  %v1410_v13 = vmax.f32 %v1112_v28, 0.0 }
 0x1cb   : > { %v1409_v25 = vmax.f32 %v1107_v32, 0.0  ;;  %v2445_v33 = vpop.f32.mrb[38].mxu1 }
 0x1cc   : > { %v1122_v34 = vadd.f32 %v2445_v33, %v3200_v15  ;;  %v1116_v37 = vpop.f32.mrb[39].mxu1 }
 0x1cd   : > { %v1117_v35 = vadd.f32 %v3200_v15, %v1116_v37  ;;  %2568 = vmatprep.mubr.f32.mxu0 %v1409_v25 }
 0x1ce   : > { %2569 = vmatmul.mubr.f32.gmra.mrb[36].mxu0 %v1410_v13  ;;  %v1412_v46 = vmax.f32 %v1122_v34, 0.0 }
 0x1cf   : > { %v1411_v24 = vmax.f32 %v1117_v35, 0.0  ;;  %v2448_v38 = vpop.f32.mrb[40].mxu1 }
 0x1d0   : > { %v1132_v39 = vadd.f32 %v2448_v38, %v3200_v15  ;;  %v1126_v36 = vpop.f32.mrb[41].mxu1 }
 0x1d1   : > { %v1127_v42 = vadd.f32 %v3200_v15, %v1126_v36  ;;  %2571 = vmatprep.mubr.f32.mxu0 %v1411_v24 }
 0x1d2   : > { %2572 = vmatmul.mubr.f32.gmra.mrb[38].mxu0 %v1412_v46  ;;  %v1414_v45 = vmax.f32 %v1132_v39, 0.0 }
 0x1d3   : > { %v1413_v54 = vmax.f32 %v1127_v42, 0.0  ;;  %v2451_v43 = vpop.f32.mrb[42].mxu1 }
 0x1d4   : > { %v1142_v44 = vadd.f32 %v2451_v43, %v3200_v15  ;;  %v1136_v0 = vpop.f32.mrb[43].mxu1 }
 0x1d5   : > { %v1137_v47 = vadd.f32 %v3200_v15, %v1136_v0  ;;  %2574 = vmatprep.mubr.f32.mxu0 %v1413_v54 }
 0x1d6   : > { %2575 = vmatmul.mubr.f32.gmra.mrb[40].mxu0 %v1414_v45  ;;  %v1416_v10 = vmax.f32 %v1142_v44, 0.0 }
 0x1d7   : > { %v1415_v53 = vmax.f32 %v1137_v47, 0.0  ;;  %v2454_v48 = vpop.f32.mrb[44].mxu1 }
 0x1d8   : > { %v1152_v49 = vadd.f32 %v2454_v48, %v3200_v15  ;;  %v1146_v63 = vpop.f32.mrb[45].mxu1 }
 0x1d9   : > { %v1147_v52 = vadd.f32 %v3200_v15, %v1146_v63  ;;  %2577 = vmatprep.mubr.f32.mxu0 %v1415_v53 }
 0x1da   : > { %2578 = vmatmul.mubr.f32.gmra.mrb[42].mxu0 %v1416_v10  ;;  %v1418_v9 = vmax.f32 %v1152_v49, 0.0 }
 0x1db   : > { %v1417_v20 = vmax.f32 %v1147_v52, 0.0  ;;  %v2457_v57 = vpop.f32.mrb[46].mxu1 }
 0x1dc   : > { %v1162_v58 = vadd.f32 %v2457_v57, %v3200_v15  ;;  %v1156_v31 = vpop.f32.mrb[47].mxu1 }
 0x1dd   : > { %v1157_v59 = vadd.f32 %v3200_v15, %v1156_v31  ;;  %2580 = vmatprep.mubr.f32.mxu0 %v1417_v20 }
 0x1de   : > { %2581 = vmatmul.mubr.f32.gmra.mrb[44].mxu0 %v1418_v9  ;;  %v1420_v41 = vmax.f32 %v1162_v58, 0.0 }
 0x1df   : > { %v1419_v19 = vmax.f32 %v1157_v59, 0.0  ;;  %v2460_v60 = vpop.f32.mrb[48].mxu1 }
 0x1e0   : > { %v1172_v61 = vadd.f32 %v2460_v60, %v3200_v15  ;;  %v1166_v30 = vpop.f32.mrb[49].mxu1 }
 0x1e1   : > { %v1167_v62 = vadd.f32 %v3200_v15, %v1166_v30  ;;  %2583 = vmatprep.mubr.f32.mxu0 %v1419_v19 }
 0x1e2   : > { %2584 = vmatmul.mubr.f32.gmra.mrb[46].mxu0 %v1420_v41  ;;  %v1422_v40 = vmax.f32 %v1172_v61, 0.0 }
 0x1e3   : > { %v1421_v51 = vmax.f32 %v1167_v62, 0.0  ;;  %v2463_v5 = vpop.f32.mrb[50].mxu1 }
 0x1e4   : > { %v1182_v6 = vadd.f32 %v2463_v5, %v3200_v15  ;;  %v1176_v4 = vpop.f32.mrb[51].mxu1 }
 0x1e5   : > { %v1177_v7 = vadd.f32 %v3200_v15, %v1176_v4  ;;  %2586 = vmatprep.mubr.f32.mxu0 %v1421_v51 }
 0x1e6   : > { %2587 = vmatmul.mubr.f32.gmra.mrb[48].mxu0 %v1422_v40  ;;  %v1424_v56 = vmax.f32 %v1182_v6, 0.0 }
 0x1e7   : > { %v1423_v50 = vmax.f32 %v1177_v7, 0.0  ;;  %v2466_v8 = vpop.f32.mrb[52].mxu1 }
 0x1e8   : > { %v1192_v12 = vadd.f32 %v2466_v8, %v3200_v15  ;;  %v1186_v1 = vpop.f32.mrb[53].mxu1 }
 0x1e9   : > { %v1187_v16 = vadd.f32 %v3200_v15, %v1186_v1  ;;  %2589 = vmatprep.mubr.f32.mxu0 %v1423_v50 }
 0x1ea   : > { %2590 = vmatmul.mubr.f32.gmra.mrb[50].mxu0 %v1424_v56  ;;  %v1426_v18 = vmax.f32 %v1192_v12, 0.0 }
 0x1eb   : > { %v1425_v17 = vmax.f32 %v1187_v16, 0.0  ;;  %v2469_v11 = vpop.f32.mrb[54].mxu1 }
 0x1ec   : > { %v1202_v21 = vadd.f32 %v2469_v11, %v3200_v15  ;;  %v1196_v55 = vpop.f32.mrb[55].mxu1 }
 0x1ed   : > { %v1197_v22 = vadd.f32 %v3200_v15, %v1196_v55  ;;  %2592 = vmatprep.mubr.f32.mxu0 %v1425_v17 }
 0x1ee   : > { %2593 = vmatmul.mubr.f32.gmra.mrb[52].mxu0 %v1426_v18  ;;  %v1428_v23 = vmax.f32 %v1202_v21, 0.0 }
 0x1ef   : > { %v1427_v27 = vmax.f32 %v1197_v22, 0.0  ;;  %v2472_v3 = vpop.f32.mrb[56].mxu1 }
 0x1f0   : > { %v1212_v26 = vadd.f32 %v2472_v3, %v3200_v15  ;;  %v1206_v14 = vpop.f32.mrb[57].mxu1 }
 0x1f1   : > { %v1207_v2 = vadd.f32 %v3200_v15, %v1206_v14  ;;  %2595 = vmatprep.mubr.f32.mxu0 %v1427_v27 }
 0x1f2   : > { %2596 = vmatmul.mubr.f32.gmra.mrb[54].mxu0 %v1428_v23  ;;  %v1430_v32 = vmax.f32 %v1212_v26, 0.0 }
 0x1f3   : > { %v1429_v28 = vmax.f32 %v1207_v2, 0.0  ;;  %v2475_v29 = vpop.f32.mrb[58].mxu1 }
 0x1f4   : > { %v1222_v25 = vadd.f32 %v2475_v29, %v3200_v15  ;;  %v1216_v33 = vpop.f32.mrb[59].mxu1 }
 0x1f5   : > { %v1217_v13 = vadd.f32 %v3200_v15, %v1216_v33  ;;  %2598 = vmatprep.mubr.f32.mxu0 %v1429_v28 }
 0x1f6   : > { %2599 = vmatmul.mubr.f32.gmra.mrb[56].mxu0 %v1430_v32  ;;  %v1432_v35 = vmax.f32 %v1222_v25, 0.0 }
 0x1f7   : > { %v1431_v34 = vmax.f32 %v1217_v13, 0.0  ;;  %v2478_v37 = vpop.f32.mrb[60].mxu1 }
 0x1f8   : > { %v1232_v24 = vadd.f32 %v2478_v37, %v3200_v15  ;;  %v1226_v38 = vpop.f32.mrb[61].mxu1 }
 0x1f9   : > { %v1227_v46 = vadd.f32 %v3200_v15, %v1226_v38  ;;  %2601 = vmatprep.mubr.f32.mxu0 %v1431_v34 }
 0x1fa   : > { %2602 = vmatmul.mubr.f32.gmra.mrb[58].mxu0 %v1432_v35  ;;  %v1434_v42 = vmax.f32 %v1232_v24, 0.0 }
 0x1fb   : > { %v1433_v39 = vmax.f32 %v1227_v46, 0.0  ;;  %v2481_v36 = vpop.f32.mrb[62].mxu1 }
 0x1fc   : > { %v1242_v54 = vadd.f32 %v2481_v36, %v3200_v15  ;;  %v1236_v43 = vpop.f32.mrb[63].mxu1 }
 0x1fd   : > { %v1237_v45 = vadd.f32 %v3200_v15, %v1236_v43  ;;  %2604 = vmatprep.mubr.f32.mxu0 %v1433_v39 }
 0x1fe   : > { %2605 = vmatmul.mubr.f32.gmra.mrb[60].mxu0 %v1434_v42  ;;  %v1436_v47 = vmax.f32 %v1242_v54, 0.0 }
 0x1ff   : > { %v1435_v44 = vmax.f32 %v1237_v45, 0.0  ;;  %v2484_v0 = vpop.f32.mrb[64].mxu1 }
 0x200   : > { %v1252_v53 = vadd.f32 %v2484_v0, %v3200_v15  ;;  %v1246_v48 = vpop.f32.mrb[65].mxu1 }
 0x201   : > { %v1247_v10 = vadd.f32 %v3200_v15, %v1246_v48  ;;  %2607 = vmatprep.mubr.f32.mxu0 %v1435_v44 }
 0x202   : > { %2608 = vmatmul.mubr.f32.gmra.mrb[62].mxu0 %v1436_v47  ;;  %v1438_v52 = vmax.f32 %v1252_v53, 0.0 }
 0x203   : > { %v1437_v49 = vmax.f32 %v1247_v10, 0.0  ;;  %v2487_v63 = vpop.f32.mrb[66].mxu1 }
 0x204   : > { %v1262_v20 = vadd.f32 %v2487_v63, %v3200_v15  ;;  %v1256_v57 = vpop.f32.mrb[67].mxu1 }
 0x205   : > { %v1257_v9 = vadd.f32 %v3200_v15, %v1256_v57  ;;  %2610 = vmatprep.mubr.f32.mxu0 %v1437_v49 }
 0x206   : > { %2611 = vmatmul.mubr.f32.gmra.mrb[64].mxu0 %v1438_v52  ;;  %v1440_v59 = vmax.f32 %v1262_v20, 0.0 }
 0x207   : > { %v1439_v58 = vmax.f32 %v1257_v9, 0.0  ;;  %v2490_v31 = vpop.f32.mrb[68].mxu1 }
 0x208   : > { %v1272_v19 = vadd.f32 %v2490_v31, %v3200_v15  ;;  %v1266_v60 = vpop.f32.mrb[69].mxu1 }
 0x209   : > { %v1267_v41 = vadd.f32 %v3200_v15, %v1266_v60  ;;  %2613 = vmatprep.mubr.f32.mxu0 %v1439_v58 }
 0x20a   : > { %2614 = vmatmul.mubr.f32.gmra.mrb[66].mxu0 %v1440_v59  ;;  %v1442_v62 = vmax.f32 %v1272_v19, 0.0 }
 0x20b   : > { %v1441_v61 = vmax.f32 %v1267_v41, 0.0  ;;  %v2493_v30 = vpop.f32.mrb[70].mxu1 }
 0x20c   : > { %v1282_v51 = vadd.f32 %v2493_v30, %v3200_v15  ;;  %v1276_v5 = vpop.f32.mrb[71].mxu1 }
 0x20d   : > { %v1277_v40 = vadd.f32 %v3200_v15, %v1276_v5  ;;  %2616 = vmatprep.mubr.f32.mxu0 %v1441_v61 }
 0x20e   : > { %2617 = vmatmul.mubr.f32.gmra.mrb[68].mxu0 %v1442_v62  ;;  %v1444_v7 = vmax.f32 %v1282_v51, 0.0 }
 0x20f   : > { %v1443_v6 = vmax.f32 %v1277_v40, 0.0  ;;  %v2496_v4 = vpop.f32.mrb[72].mxu1 }
 0x210   : > { %v1292_v50 = vadd.f32 %v2496_v4, %v3200_v15  ;;  %v1286_v8 = vpop.f32.mrb[73].mxu1 }
 0x211   : > { %v1287_v56 = vadd.f32 %v3200_v15, %v1286_v8  ;;  %2619 = vmatprep.mubr.f32.mxu0 %v1443_v6 }
 0x212   : > { %2620 = vmatmul.mubr.f32.gmra.mrb[70].mxu0 %v1444_v7  ;;  %v1446_v16 = vmax.f32 %v1292_v50, 0.0 }
 0x213   : > { %v1445_v12 = vmax.f32 %v1287_v56, 0.0  ;;  %v2499_v1 = vpop.f32.mrb[74].mxu1 }
 0x214   : > { %v1302_v17 = vadd.f32 %v2499_v1, %v3200_v15  ;;  %v1296_v11 = vpop.f32.mrb[75].mxu1 }
 0x215   : > { %v1297_v18 = vadd.f32 %v3200_v15, %v1296_v11  ;;  %2622 = vmatprep.mubr.f32.mxu0 %v1445_v12 }
 0x216   : > { %2623 = vmatmul.mubr.f32.gmra.mrb[72].mxu0 %v1446_v16  ;;  %v1448_v22 = vmax.f32 %v1302_v17, 0.0 }
 0x217   : > { %v1447_v21 = vmax.f32 %v1297_v18, 0.0  ;;  %v2502_v55 = vpop.f32.mrb[76].mxu1  ;;  %v3269_v18 = vld [vmem:[%s3479_s6] ss:$0 sm:$0xff] }
 0x218   : > { %v1312_v27 = vadd.f32 %v2502_v55, %v3200_v15  ;;  %v1306_v3 = vpop.f32.mrb[77].mxu1 }
 0x219   : > { %v1307_v23 = vadd.f32 %v3200_v15, %v1306_v3  ;;  %2625 = vmatprep.mubr.f32.mxu0 %v1447_v21 }
 0x21a   : > { %2626 = vmatmul.mubr.f32.gmra.mrb[74].mxu0 %v1448_v22  ;;  %v1450_v2 = vmax.f32 %v1312_v27, 0.0 }
 0x21b   : > { %v1449_v26 = vmax.f32 %v1307_v23, 0.0  ;;  %v2505_v14 = vpop.f32.mrb[78].mxu1 }
 0x21c   : > { %v1322_v28 = vadd.f32 %v2505_v14, %v3200_v15  ;;  %v1316_v29 = vpop.f32.mrb[79].mxu1 }
 0x21d   : > { %v1317_v32 = vadd.f32 %v3200_v15, %v1316_v29  ;;  %2628 = vmatprep.mubr.f32.mxu0 %v1449_v26 }
 0x21e   : > { %2629 = vmatmul.mubr.f32.gmra.mrb[76].mxu0 %v1450_v2  ;;  %v1452_v13 = vmax.f32 %v1322_v28, 0.0 }
 0x21f   : > { %v1451_v25 = vmax.f32 %v1317_v32, 0.0  ;;  %v2508_v33 = vpop.f32.mrb[80].mxu1 }
 0x220   : > { %v1332_v34 = vadd.f32 %v2508_v33, %v3200_v15  ;;  %v1326_v37 = vpop.f32.mrb[81].mxu1 }
 0x221   : > { %v1327_v35 = vadd.f32 %v3200_v15, %v1326_v37  ;;  %2631 = vmatprep.mubr.f32.mxu0 %v1451_v25 }
 0x222   : > { %2632 = vmatmul.mubr.f32.gmra.mrb[78].mxu0 %v1452_v13  ;;  %v1454_v46 = vmax.f32 %v1332_v34, 0.0 }
 0x223   : > { %v1453_v24 = vmax.f32 %v1327_v35, 0.0  ;;  %v2511_v38 = vpop.f32.mrb[82].mxu1 }
 0x224   : > { %v1342_v39 = vadd.f32 %v2511_v38, %v3200_v15  ;;  %v1336_v36 = vpop.f32.mrb[83].mxu1 }
 0x225   : > { %v1337_v42 = vadd.f32 %v3200_v15, %v1336_v36  ;;  %2634 = vmatprep.mubr.f32.mxu0 %v1453_v24 }
 0x226   : > { %2635 = vmatmul.mubr.f32.gmra.mrb[80].mxu0 %v1454_v46  ;;  %v1456_v45 = vmax.f32 %v1342_v39, 0.0 }
 0x227   : > { %v1455_v54 = vmax.f32 %v1337_v42, 0.0  ;;  %v2514_v43 = vpop.f32.mrb[84].mxu1 }
 0x228   : > { %v1352_v44 = vadd.f32 %v2514_v43, %v3200_v15  ;;  %v1346_v0 = vpop.f32.mrb[85].mxu1 }
 0x229   : > { %v1347_v47 = vadd.f32 %v3200_v15, %v1346_v0  ;;  %2637 = vmatprep.mubr.f32.mxu0 %v1455_v54 }
 0x22a   : > { %2638 = vmatmul.mubr.f32.gmra.mrb[82].mxu0 %v1456_v45  ;;  %v1458_v10 = vmax.f32 %v1352_v44, 0.0 }
 0x22b   : > { %v1457_v53 = vmax.f32 %v1347_v47, 0.0  ;;  %v2517_v48 = vpop.f32.mrb[86].mxu1 }
 0x22c   : > { %v1362_v49 = vadd.f32 %v2517_v48, %v3200_v15  ;;  %v1356_v63 = vpop.f32.mrb[87].mxu1 }
 0x22d   : > { %v1357_v52 = vadd.f32 %v3200_v15, %v1356_v63  ;;  %2640 = vmatprep.mubr.f32.mxu0 %v1457_v53 }
 0x22e   : > { %2641 = vmatmul.mubr.f32.gmra.mrb[84].mxu0 %v1458_v10  ;;  %v1460_v9 = vmax.f32 %v1362_v49, 0.0 }
 0x22f   : > { %v1459_v20 = vmax.f32 %v1357_v52, 0.0  ;;  %v2520_v57 = vpop.f32.mrb[88].mxu1 }
 0x230   : > { %v1372_v58 = vadd.f32 %v2520_v57, %v3200_v15  ;;  %v1366_v31 = vpop.f32.mrb[89].mxu1 }
 0x231   : > { %v1367_v59 = vadd.f32 %v3200_v15, %v1366_v31  ;;  %2643 = vmatprep.mubr.f32.mxu0 %v1459_v20 }
 0x232   : > { %2644 = vmatmul.mubr.f32.gmra.mrb[86].mxu0 %v1460_v9  ;;  %v1462_v41 = vmax.f32 %v1372_v58, 0.0 }
 0x233   : > { %v1461_v19 = vmax.f32 %v1367_v59, 0.0  ;;  %v2523_v60 = vpop.f32.mrb[90].mxu1 }
 0x234   : > { %v1382_v61 = vadd.f32 %v2523_v60, %v3200_v15  ;;  %v1376_v30 = vpop.f32.mrb[91].mxu1 }
 0x235   : > { %v1377_v62 = vadd.f32 %v3200_v15, %v1376_v30  ;;  %2646 = vmatprep.mubr.f32.mxu0 %v1461_v19 }
 0x236   : > { %2647 = vmatmul.mubr.f32.gmra.mrb[88].mxu0 %v1462_v41  ;;  %v1464_v40 = vmax.f32 %v1382_v61, 0.0 }
 0x237   : > { %v1463_v51 = vmax.f32 %v1377_v62, 0.0  ;;  %v2526_v5 = vpop.f32.mrb[92].mxu1 }
 0x238   : > { %v1392_v6 = vadd.f32 %v2526_v5, %v3200_v15  ;;  %v1386_v4 = vpop.f32.mrb[93].mxu1 }
 0x239   : > { %v1387_v7 = vadd.f32 %v3200_v15, %v1386_v4  ;;  %2649 = vmatprep.mubr.f32.mxu0 %v1463_v51 }
 0x23a   : > { %2650 = vmatmul.mubr.f32.gmra.mrb[90].mxu0 %v1464_v40  ;;  %v1466_v56 = vmax.f32 %v1392_v6, 0.0 }
 0x23b   : > { %v1465_v50 = vmax.f32 %v1387_v7, 0.0  ;;  %v2529_v8 = vpop.f32.mrb[94].mxu1 }
 0x23c   : > { %v1402_v12 = vadd.f32 %v2529_v8, %v3200_v15  ;;  %v1396_v1 = vpop.f32.mrb[95].mxu1 }
 0x23d   : > { %v1397_v16 = vadd.f32 %v3200_v15, %v1396_v1  ;;  %2652 = vmatprep.mubr.f32.mxu0 %v1465_v50 }
 0x23e   : > { %2653 = vmatmul.mubr.f32.gmra.mrb[92].mxu0 %v1466_v56  ;;  %v1468_v11 = vmax.f32 %v1402_v12, 0.0 }
 0x23f   : > { %v1467_v17 = vmax.f32 %v1397_v16, 0.0 }
 0x241   : > { %2655 = vmatprep.mubr.f32.mxu0 %v1467_v17 }
 0x242   : > { %2656 = vmatmul.mubr.f32.gmra.mrb[94].mxu0 %v1468_v11 }
 0x299   : > { %v2564_v15 = vpop.f32.mrb[32].mxu0 }
 0x29a   : > { %v1564_v21 = vadd.f32 %v2564_v15, %v3269_v18  ;;  %v1558_v55 = vpop.f32.mrb[33].mxu0 }
 0x29b   : > { %v1559_v22 = vadd.f32 %v3269_v18, %v1558_v55 }
 0x29c   : > { %1879 = vst.msk [vmem:[%s3276_s26 + $0x8] sm:$0xff] %vm1877_vm1, %v1564_v21 }
 0x29d   : > { %1878 = vst.msk [vmem:[%s3276_s26] sm:$0xff] %vm1877_vm1, %v1559_v22  ;;  %v2567_v27 = vpop.f32.mrb[34].mxu0 }
 0x29e   : > { %v1574_v3 = vadd.f32 %v2567_v27, %v3269_v18  ;;  %v1568_v23 = vpop.f32.mrb[35].mxu0 }
 0x29f   : > { %v1569_v26 = vadd.f32 %v3269_v18, %v1568_v23 }
 0x2a0   : > { %1881 = vst.msk [vmem:[%s3276_s26 + $0x18] sm:$0xff] %vm1877_vm1, %v1574_v3 }
 0x2a1   : > { %1880 = vst.msk [vmem:[%s3276_s26 + $0x10] sm:$0xff] %vm1877_vm1, %v1569_v26  ;;  %v2570_v14 = vpop.f32.mrb[36].mxu0 }
 0x2a2   : > { %v1584_v2 = vadd.f32 %v2570_v14, %v3269_v18  ;;  %v1578_v28 = vpop.f32.mrb[37].mxu0 }
 0x2a3   : > { %v1579_v29 = vadd.f32 %v3269_v18, %v1578_v28 }
 0x2a4   : > { %1883 = vst.msk [vmem:[%s3276_s26 + $0x28] sm:$0xff] %vm1877_vm1, %v1584_v2 }
 0x2a5   : > { %1882 = vst.msk [vmem:[%s3276_s26 + $0x20] sm:$0xff] %vm1877_vm1, %v1579_v29  ;;  %v2573_v32 = vpop.f32.mrb[38].mxu0 }
 0x2a6   : > { %v1594_v25 = vadd.f32 %v2573_v32, %v3269_v18  ;;  %v1588_v33 = vpop.f32.mrb[39].mxu0 }
 0x2a7   : > { %v1589_v13 = vadd.f32 %v3269_v18, %v1588_v33 }
 0x2a8   : > { %1885 = vst.msk [vmem:[%s3276_s26 + $0x38] sm:$0xff] %vm1877_vm1, %v1594_v25 }
 0x2a9   : > { %1884 = vst.msk [vmem:[%s3276_s26 + $0x30] sm:$0xff] %vm1877_vm1, %v1589_v13  ;;  %v2576_v34 = vpop.f32.mrb[40].mxu0 }
 0x2aa   : > { %v1604_v37 = vadd.f32 %v2576_v34, %v3269_v18  ;;  %v1598_v35 = vpop.f32.mrb[41].mxu0 }
 0x2ab   : > { %v1599_v24 = vadd.f32 %v3269_v18, %v1598_v35 }
 0x2ac   : > { %1887 = vst.msk [vmem:[%s3276_s26 + $0x48] sm:$0xff] %vm1877_vm1, %v1604_v37 }
 0x2ad   : > { %1886 = vst.msk [vmem:[%s3276_s26 + $0x40] sm:$0xff] %vm1877_vm1, %v1599_v24  ;;  %v2579_v38 = vpop.f32.mrb[42].mxu0 }
 0x2ae   : > { %v1614_v46 = vadd.f32 %v2579_v38, %v3269_v18  ;;  %v1608_v39 = vpop.f32.mrb[43].mxu0 }
 0x2af   : > { %v1609_v36 = vadd.f32 %v3269_v18, %v1608_v39 }
 0x2b0   : > { %1889 = vst.msk [vmem:[%s3276_s26 + $0x58] sm:$0xff] %vm1877_vm1, %v1614_v46 }
 0x2b1   : > { %1888 = vst.msk [vmem:[%s3276_s26 + $0x50] sm:$0xff] %vm1877_vm1, %v1609_v36  ;;  %v2582_v42 = vpop.f32.mrb[44].mxu0 }
 0x2b2   : > { %v1624_v54 = vadd.f32 %v2582_v42, %v3269_v18  ;;  %v1618_v43 = vpop.f32.mrb[45].mxu0 }
 0x2b3   : > { %v1619_v45 = vadd.f32 %v3269_v18, %v1618_v43 }
 0x2b4   : > { %1891 = vst.msk [vmem:[%s3276_s26 + $0x68] sm:$0xff] %vm1877_vm1, %v1624_v54 }
 0x2b5   : > { %1890 = vst.msk [vmem:[%s3276_s26 + $0x60] sm:$0xff] %vm1877_vm1, %v1619_v45  ;;  %v2585_v44 = vpop.f32.mrb[46].mxu0 }
 0x2b6   : > { %v1634_v0 = vadd.f32 %v2585_v44, %v3269_v18  ;;  %v1628_v47 = vpop.f32.mrb[47].mxu0 }
 0x2b7   : > { %v1629_v53 = vadd.f32 %v3269_v18, %v1628_v47 }
 0x2b8   : > { %1893 = vst.msk [vmem:[%s3276_s26 + $0x78] sm:$0xff] %vm1877_vm1, %v1634_v0 }
 0x2b9   : > { %1892 = vst.msk [vmem:[%s3276_s26 + $0x70] sm:$0xff] %vm1877_vm1, %v1629_v53  ;;  %v2588_v48 = vpop.f32.mrb[48].mxu0 }
 0x2ba   : > { %v1644_v10 = vadd.f32 %v2588_v48, %v3269_v18  ;;  %v1638_v49 = vpop.f32.mrb[49].mxu0 }
 0x2bb   : > { %v1639_v63 = vadd.f32 %v3269_v18, %v1638_v49 }
 0x2bc   : > { %1895 = vst.msk [vmem:[%s3276_s26 + $0x88] sm:$0xff] %vm1877_vm1, %v1644_v10 }
 0x2bd   : > { %1894 = vst.msk [vmem:[%s3276_s26 + $0x80] sm:$0xff] %vm1877_vm1, %v1639_v63  ;;  %v2591_v52 = vpop.f32.mrb[50].mxu0 }
 0x2be   : > { %v1654_v20 = vadd.f32 %v2591_v52, %v3269_v18  ;;  %v1648_v57 = vpop.f32.mrb[51].mxu0 }
 0x2bf   : > { %v1649_v9 = vadd.f32 %v3269_v18, %v1648_v57 }
 0x2c0   : > { %1897 = vst.msk [vmem:[%s3276_s26 + $0x98] sm:$0xff] %vm1877_vm1, %v1654_v20 }
 0x2c1   : > { %1896 = vst.msk [vmem:[%s3276_s26 + $0x90] sm:$0xff] %vm1877_vm1, %v1649_v9  ;;  %v2594_v58 = vpop.f32.mrb[52].mxu0 }
 0x2c2   : > { %v1664_v31 = vadd.f32 %v2594_v58, %v3269_v18  ;;  %v1658_v59 = vpop.f32.mrb[53].mxu0 }
 0x2c3   : > { %v1659_v19 = vadd.f32 %v3269_v18, %v1658_v59 }
 0x2c4   : > { %1899 = vst.msk [vmem:[%s3276_s26 + $0xa8] sm:$0xff] %vm1877_vm1, %v1664_v31 }
 0x2c5   : > { %1898 = vst.msk [vmem:[%s3276_s26 + $0xa0] sm:$0xff] %vm1877_vm1, %v1659_v19  ;;  %v2597_v60 = vpop.f32.mrb[54].mxu0 }
 0x2c6   : > { %v1674_v41 = vadd.f32 %v2597_v60, %v3269_v18  ;;  %v1668_v61 = vpop.f32.mrb[55].mxu0 }
 0x2c7   : > { %v1669_v30 = vadd.f32 %v3269_v18, %v1668_v61 }
 0x2c8   : > { %1901 = vst.msk [vmem:[%s3276_s26 + $0xb8] sm:$0xff] %vm1877_vm1, %v1674_v41 }
 0x2c9   : > { %1900 = vst.msk [vmem:[%s3276_s26 + $0xb0] sm:$0xff] %vm1877_vm1, %v1669_v30  ;;  %v2600_v62 = vpop.f32.mrb[56].mxu0 }
 0x2ca   : > { %v1684_v51 = vadd.f32 %v2600_v62, %v3269_v18  ;;  %v1678_v5 = vpop.f32.mrb[57].mxu0 }
 0x2cb   : > { %v1679_v40 = vadd.f32 %v3269_v18, %v1678_v5 }
 0x2cc   : > { %1903 = vst.msk [vmem:[%s3276_s26 + $0xc8] sm:$0xff] %vm1877_vm1, %v1684_v51 }
 0x2cd   : > { %1902 = vst.msk [vmem:[%s3276_s26 + $0xc0] sm:$0xff] %vm1877_vm1, %v1679_v40  ;;  %v2603_v6 = vpop.f32.mrb[58].mxu0 }
 0x2ce   : > { %v1694_v4 = vadd.f32 %v2603_v6, %v3269_v18  ;;  %v1688_v7 = vpop.f32.mrb[59].mxu0 }
 0x2cf   : > { %v1689_v50 = vadd.f32 %v3269_v18, %v1688_v7 }
 0x2d0   : > { %1905 = vst.msk [vmem:[%s3276_s26 + $0xd8] sm:$0xff] %vm1877_vm1, %v1694_v4 }
 0x2d1   : > { %1904 = vst.msk [vmem:[%s3276_s26 + $0xd0] sm:$0xff] %vm1877_vm1, %v1689_v50  ;;  %v2606_v8 = vpop.f32.mrb[60].mxu0 }
 0x2d2   : > { %v1704_v56 = vadd.f32 %v2606_v8, %v3269_v18  ;;  %v1698_v12 = vpop.f32.mrb[61].mxu0 }
 0x2d3   : > { %v1699_v1 = vadd.f32 %v3269_v18, %v1698_v12 }
 0x2d4   : > { %1907 = vst.msk [vmem:[%s3276_s26 + $0xe8] sm:$0xff] %vm1877_vm1, %v1704_v56 }
 0x2d5   : > { %1906 = vst.msk [vmem:[%s3276_s26 + $0xe0] sm:$0xff] %vm1877_vm1, %v1699_v1  ;;  %v2609_v16 = vpop.f32.mrb[62].mxu0 }
 0x2d6   : > { %v1714_v17 = vadd.f32 %v2609_v16, %v3269_v18  ;;  %v1708_v11 = vpop.f32.mrb[63].mxu0 }
 0x2d7   : > { %v1709_v15 = vadd.f32 %v3269_v18, %v1708_v11 }
 0x2d8   : > { %1909 = vst.msk [vmem:[%s3276_s26 + $0xf8] sm:$0xff] %vm1877_vm1, %v1714_v17 }
 0x2d9   : > { %1908 = vst.msk [vmem:[%s3276_s26 + $0xf0] sm:$0xff] %vm1877_vm1, %v1709_v15  ;;  %v2612_v21 = vpop.f32.mrb[64].mxu0 }
 0x2da   : > { %v1724_v55 = vadd.f32 %v2612_v21, %v3269_v18  ;;  %v1718_v22 = vpop.f32.mrb[65].mxu0 }
 0x2db   : > { %v1719_v27 = vadd.f32 %v3269_v18, %v1718_v22 }
 0x2dc   : > { %1911 = vst.msk [vmem:[%s3276_s26 + $0x108] sm:$0xff] %vm1877_vm1, %v1724_v55 }
 0x2dd   : > { %1910 = vst.msk [vmem:[%s3276_s26 + $0x100] sm:$0xff] %vm1877_vm1, %v1719_v27  ;;  %v2615_v3 = vpop.f32.mrb[66].mxu0 }
 0x2de   : > { %v1734_v23 = vadd.f32 %v2615_v3, %v3269_v18  ;;  %v1728_v26 = vpop.f32.mrb[67].mxu0 }
 0x2df   : > { %v1729_v14 = vadd.f32 %v3269_v18, %v1728_v26 }
 0x2e0   : > { %1913 = vst.msk [vmem:[%s3276_s26 + $0x118] sm:$0xff] %vm1877_vm1, %v1734_v23 }
 0x2e1   : > { %1912 = vst.msk [vmem:[%s3276_s26 + $0x110] sm:$0xff] %vm1877_vm1, %v1729_v14  ;;  %v2618_v2 = vpop.f32.mrb[68].mxu0 }
 0x2e2   : > { %v1744_v28 = vadd.f32 %v2618_v2, %v3269_v18  ;;  %v1738_v29 = vpop.f32.mrb[69].mxu0 }
 0x2e3   : > { %v1739_v32 = vadd.f32 %v3269_v18, %v1738_v29 }
 0x2e4   : > { %1915 = vst.msk [vmem:[%s3276_s26 + $0x128] sm:$0xff] %vm1877_vm1, %v1744_v28 }
 0x2e5   : > { %1914 = vst.msk [vmem:[%s3276_s26 + $0x120] sm:$0xff] %vm1877_vm1, %v1739_v32  ;;  %v2621_v25 = vpop.f32.mrb[70].mxu0 }
 0x2e6   : > { %v1754_v33 = vadd.f32 %v2621_v25, %v3269_v18  ;;  %v1748_v13 = vpop.f32.mrb[71].mxu0 }
 0x2e7   : > { %v1749_v34 = vadd.f32 %v3269_v18, %v1748_v13 }
 0x2e8   : > { %1917 = vst.msk [vmem:[%s3276_s26 + $0x138] sm:$0xff] %vm1877_vm1, %v1754_v33 }
 0x2e9   : > { %1916 = vst.msk [vmem:[%s3276_s26 + $0x130] sm:$0xff] %vm1877_vm1, %v1749_v34  ;;  %v2624_v37 = vpop.f32.mrb[72].mxu0 }
 0x2ea   : > { %v1764_v35 = vadd.f32 %v2624_v37, %v3269_v18  ;;  %v1758_v24 = vpop.f32.mrb[73].mxu0 }
 0x2eb   : > { %v1759_v38 = vadd.f32 %v3269_v18, %v1758_v24 }
 0x2ec   : > { %1919 = vst.msk [vmem:[%s3276_s26 + $0x148] sm:$0xff] %vm1877_vm1, %v1764_v35 }
 0x2ed   : > { %1918 = vst.msk [vmem:[%s3276_s26 + $0x140] sm:$0xff] %vm1877_vm1, %v1759_v38  ;;  %v2627_v46 = vpop.f32.mrb[74].mxu0 }
 0x2ee   : > { %v1774_v39 = vadd.f32 %v2627_v46, %v3269_v18  ;;  %v1768_v36 = vpop.f32.mrb[75].mxu0 }
 0x2ef   : > { %v1769_v42 = vadd.f32 %v3269_v18, %v1768_v36 }
 0x2f0   : > { %1921 = vst.msk [vmem:[%s3276_s26 + $0x158] sm:$0xff] %vm1877_vm1, %v1774_v39 }
 0x2f1   : > { %1920 = vst.msk [vmem:[%s3276_s26 + $0x150] sm:$0xff] %vm1877_vm1, %v1769_v42  ;;  %v2630_v54 = vpop.f32.mrb[76].mxu0 }
 0x2f2   : > { %v1784_v43 = vadd.f32 %v2630_v54, %v3269_v18  ;;  %v1778_v45 = vpop.f32.mrb[77].mxu0 }
 0x2f3   : > { %v1779_v44 = vadd.f32 %v3269_v18, %v1778_v45 }
 0x2f4   : > { %1923 = vst.msk [vmem:[%s3276_s26 + $0x168] sm:$0xff] %vm1877_vm1, %v1784_v43 }
 0x2f5   : > { %1922 = vst.msk [vmem:[%s3276_s26 + $0x160] sm:$0xff] %vm1877_vm1, %v1779_v44  ;;  %v2633_v0 = vpop.f32.mrb[78].mxu0 }
 0x2f6   : > { %v1794_v47 = vadd.f32 %v2633_v0, %v3269_v18  ;;  %v1788_v53 = vpop.f32.mrb[79].mxu0 }
 0x2f7   : > { %v1789_v48 = vadd.f32 %v3269_v18, %v1788_v53 }
 0x2f8   : > { %1925 = vst.msk [vmem:[%s3276_s26 + $0x178] sm:$0xff] %vm1877_vm1, %v1794_v47 }
 0x2f9   : > { %1924 = vst.msk [vmem:[%s3276_s26 + $0x170] sm:$0xff] %vm1877_vm1, %v1789_v48  ;;  %v2636_v10 = vpop.f32.mrb[80].mxu0 }
 0x2fa   : > { %v1804_v49 = vadd.f32 %v2636_v10, %v3269_v18  ;;  %v1798_v63 = vpop.f32.mrb[81].mxu0 }
 0x2fb   : > { %v1799_v52 = vadd.f32 %v3269_v18, %v1798_v63 }
 0x2fc   : > { %1927 = vst.msk [vmem:[%s3276_s26 + $0x188] sm:$0xff] %vm1877_vm1, %v1804_v49 }
 0x2fd   : > { %1926 = vst.msk [vmem:[%s3276_s26 + $0x180] sm:$0xff] %vm1877_vm1, %v1799_v52  ;;  %v2639_v20 = vpop.f32.mrb[82].mxu0 }
 0x2fe   : > { %v1814_v57 = vadd.f32 %v2639_v20, %v3269_v18  ;;  %v1808_v9 = vpop.f32.mrb[83].mxu0 }
 0x2ff   : > { %v1809_v58 = vadd.f32 %v3269_v18, %v1808_v9 }
 0x300   : > { %1929 = vst.msk [vmem:[%s3276_s26 + $0x198] sm:$0xff] %vm1877_vm1, %v1814_v57 }
 0x301   : > { %1928 = vst.msk [vmem:[%s3276_s26 + $0x190] sm:$0xff] %vm1877_vm1, %v1809_v58  ;;  %v2642_v31 = vpop.f32.mrb[84].mxu0 }
 0x302   : > { %v1824_v59 = vadd.f32 %v2642_v31, %v3269_v18  ;;  %v1818_v19 = vpop.f32.mrb[85].mxu0 }
 0x303   : > { %v1819_v60 = vadd.f32 %v3269_v18, %v1818_v19 }
 0x304   : > { %1931 = vst.msk [vmem:[%s3276_s26 + $0x1a8] sm:$0xff] %vm1877_vm1, %v1824_v59 }
 0x305   : > { %1930 = vst.msk [vmem:[%s3276_s26 + $0x1a0] sm:$0xff] %vm1877_vm1, %v1819_v60  ;;  %v2645_v41 = vpop.f32.mrb[86].mxu0 }
 0x306   : > { %v1834_v61 = vadd.f32 %v2645_v41, %v3269_v18  ;;  %v1828_v30 = vpop.f32.mrb[87].mxu0 }
 0x307   : > { %v1829_v62 = vadd.f32 %v3269_v18, %v1828_v30 }
 0x308   : > { %1933 = vst.msk [vmem:[%s3276_s26 + $0x1b8] sm:$0xff] %vm1877_vm1, %v1834_v61 }
 0x309   : > { %1932 = vst.msk [vmem:[%s3276_s26 + $0x1b0] sm:$0xff] %vm1877_vm1, %v1829_v62  ;;  %v2648_v51 = vpop.f32.mrb[88].mxu0 }
 0x30a   : > { %v1844_v5 = vadd.f32 %v2648_v51, %v3269_v18  ;;  %v1838_v40 = vpop.f32.mrb[89].mxu0 }
 0x30b   : > { %v1839_v6 = vadd.f32 %v3269_v18, %v1838_v40 }
 0x30c   : > { %1935 = vst.msk [vmem:[%s3276_s26 + $0x1c8] sm:$0xff] %vm1877_vm1, %v1844_v5 }
 0x30d   : > { %1934 = vst.msk [vmem:[%s3276_s26 + $0x1c0] sm:$0xff] %vm1877_vm1, %v1839_v6  ;;  %v2651_v4 = vpop.f32.mrb[90].mxu0 }
 0x30e   : > { %v1854_v7 = vadd.f32 %v2651_v4, %v3269_v18  ;;  %v1848_v50 = vpop.f32.mrb[91].mxu0 }
 0x30f   : > { %v1849_v8 = vadd.f32 %v3269_v18, %v1848_v50 }
 0x310   : > { %1937 = vst.msk [vmem:[%s3276_s26 + $0x1d8] sm:$0xff] %vm1877_vm1, %v1854_v7 }
 0x311   : > { %1936 = vst.msk [vmem:[%s3276_s26 + $0x1d0] sm:$0xff] %vm1877_vm1, %v1849_v8  ;;  %v2654_v56 = vpop.f32.mrb[92].mxu0 }
 0x312   : > { %v1864_v12 = vadd.f32 %v2654_v56, %v3269_v18  ;;  %v1858_v1 = vpop.f32.mrb[93].mxu0 }
 0x313   : > { %v1859_v16 = vadd.f32 %v3269_v18, %v1858_v1 }
 0x314   : > { %1939 = vst.msk [vmem:[%s3276_s26 + $0x1e8] sm:$0xff] %vm1877_vm1, %v1864_v12 }
 0x315   : > { %1938 = vst.msk [vmem:[%s3276_s26 + $0x1e0] sm:$0xff] %vm1877_vm1, %v1859_v16  ;;  %v2657_v17 = vpop.f32.mrb[94].mxu0 }
 0x316   : > { %v1874_v11 = vadd.f32 %v2657_v17, %v3269_v18  ;;  %v1868_v15 = vpop.f32.mrb[95].mxu0 }
 0x317   : > { %v1869_v21 = vadd.f32 %v3269_v18, %v1868_v15 }
 0x318   : > { %1941 = vst.msk [vmem:[%s3276_s26 + $0x1f8] sm:$0xff] %vm1877_vm1, %v1874_v11 }
 0x319   : > { %1940 = vst.msk [vmem:[%s3276_s26 + $0x1f0] sm:$0xff] %vm1877_vm1, %v1869_v21 }
 0x31a PF: > { %s17_s24 = sadd.s32 1, %s2742_s24  }
 0x31b   : > { %p14_p4 = scmp.ge.s32.totalorder %s17_s24, 4  }
 0x31d   :  { %16 = sbr.rel (!%p14_p4) target bundleno = 1 (0x1), region = 78 }

</bundles_post_ra>
